<compile_context>
chip_gen: v5e
topology: v5e:2x2
jax: 0.10.0
libtpu: 0.0.40
codegen_flags: <defaults>
</compile_context>

<pallas_src>
import functools

import jax
import jax.numpy as jnp
from jax import lax
from jax.experimental import pallas as pl
from jax.experimental.pallas import tpu as pltpu

HIDDEN = 32


def _sigmoid(x):
    return jax.nn.sigmoid(x)


def lstm_kernel(x_ref, wih0_ref, whh0_ref, b0_ref, wih1_ref, whh1_ref, b1_ref,
                wm_ref, bm_ref, out_ref,
                state_sc, gx_sc, h0all_sc, h1all_sc, *, chunk, batch):
    """One grid step = `chunk` timesteps of the 2-layer LSTM + MLP head.

    x_ref      : (chunk*B, F)   timestep-major, batch-minor rows
    gx_sc      : (chunk*B, 4H)  batched input-gate projections (reused per layer)
    h0all_sc   : (chunk*B, H)   layer-0 hidden states for the chunk
    h1all_sc   : (chunk*B, H)   layer-1 hidden states for the chunk
    state_sc   : (4, B, H)      (h0, c0, h1, c1) carried across chunks
    """
    H = HIDDEN
    B = batch

    @pl.when(pl.program_id(0) == 0)
    def _():
        state_sc[...] = jnp.zeros(state_sc.shape, jnp.float32)

    # Hoist recurrent-weight loads out of the time loops.
    whh0 = whh0_ref[...]
    whh1 = whh1_ref[...]

    def gates_to_hc(g, c):
        # PyTorch gate order: i, f, g, o
        i = _sigmoid(g[:, 0 * H:1 * H])
        f = _sigmoid(g[:, 1 * H:2 * H])
        gg = jnp.tanh(g[:, 2 * H:3 * H])
        o = _sigmoid(g[:, 3 * H:4 * H])
        c_new = f * c + i * gg
        h_new = o * jnp.tanh(c_new)
        return h_new, c_new

    # ---- layer 0: batch the input projection (+ bias) for the whole chunk ----
    gx_sc[...] = (jnp.dot(x_ref[...], wih0_ref[...],
                          preferred_element_type=jnp.float32) + b0_ref[...])

    def body0(t, carry):
        h, c = carry
        off = pl.multiple_of(t * B, B)
        g = gx_sc[pl.ds(off, B), :] + jnp.dot(
            h, whh0, preferred_element_type=jnp.float32)
        h, c = gates_to_hc(g, c)
        h0all_sc[pl.ds(off, B), :] = h
        return h, c

    h0, c0 = lax.fori_loop(0, chunk, body0,
                           (state_sc[0], state_sc[1]), unroll=True)

    # ---- layer 1: input projection batched over the chunk's layer-0 output ----
    gx_sc[...] = (jnp.dot(h0all_sc[...], wih1_ref[...],
                          preferred_element_type=jnp.float32) + b1_ref[...])

    def body1(t, carry):
        h, c = carry
        off = pl.multiple_of(t * B, B)
        g = gx_sc[pl.ds(off, B), :] + jnp.dot(
            h, whh1, preferred_element_type=jnp.float32)
        h, c = gates_to_hc(g, c)
        h1all_sc[pl.ds(off, B), :] = h
        return h, c

    h1, c1 = lax.fori_loop(0, chunk, body1,
                           (state_sc[2], state_sc[3]), unroll=True)

    # Carry state to the next chunk.
    state_sc[0] = h0
    state_sc[1] = c0
    state_sc[2] = h1
    state_sc[3] = c1

    # ---- mlp1 + sigmoid, once per chunk over all timesteps ----
    out_ref[...] = _sigmoid(
        jnp.dot(h1all_sc[...], wm_ref[...],
                preferred_element_type=jnp.float32) + bm_ref[...])


def lstm_model_forward(x_bfs, params, *, chunk=None):
    """x_bfs: (batch, n_features, seq) float32. Returns flat (seq*batch,)."""
    H = HIDDEN
    x_sbf = jnp.transpose(x_bfs, (2, 0, 1)).astype(jnp.float32)  # (seq, B, F)
    seq, B, F = x_sbf.shape
    x2d = x_sbf.reshape(seq * B, F)                              # t-major rows

    if chunk is None:
        chunk = seq                      # whole sequence in one kernel call
    assert seq % chunk == 0
    num_chunks = seq // chunk
    # (8,128) block rule: either single chunk (full-dim block) or 8-aligned rows.
    assert num_chunks == 1 or (chunk * B) % 8 == 0

    wih0, whh0, b0 = params["wih0"], params["whh0"], params["b0"]
    wih1, whh1, b1 = params["wih1"], params["whh1"], params["b1"]
    wm, bm = params["wm"], params["bm"]

    full = lambda shape: pl.BlockSpec(shape, lambda i: tuple(0 for _ in shape))
    kernel = functools.partial(lstm_kernel, chunk=chunk, batch=B)

    out = pl.pallas_call(
        kernel,
        out_shape=jax.ShapeDtypeStruct((seq * B, 1), jnp.float32),
        grid_spec=pltpu.PrefetchScalarGridSpec(
            num_scalar_prefetch=0,
            grid=(num_chunks,),
            in_specs=[
                pl.BlockSpec((chunk * B, F), lambda i: (i, 0)),  # x rows
                full((F, 4 * H)),                                # W_ih layer 0
                full((H, 4 * H)),                                # W_hh layer 0
                full((1, 4 * H)),                                # bias layer 0
                full((H, 4 * H)),                                # W_ih layer 1
                full((H, 4 * H)),                                # W_hh layer 1
                full((1, 4 * H)),                                # bias layer 1
                full((H, 1)),                                    # mlp weight
                full((1, 1)),                                    # mlp bias
            ],
            out_specs=pl.BlockSpec((chunk * B, 1), lambda i: (i, 0)),
            scratch_shapes=[
                pltpu.VMEM((4, B, H), jnp.float32),              # h0,c0,h1,c1
                pltpu.VMEM((chunk * B, 4 * H), jnp.float32),     # gate precompute
                pltpu.VMEM((chunk * B, H), jnp.float32),         # h0 over chunk
                pltpu.VMEM((chunk * B, H), jnp.float32),         # h1 over chunk
            ],
        ),
        compiler_params=pltpu.CompilerParams(
            dimension_semantics=("arbitrary",)),   # sequential recurrence
    )(x2d, wih0, whh0, b0, wih1, whh1, b1, wm, bm)

    return out.reshape(-1)


def ref_forward(x_bfs, params):
    """Pure-JAX reference mirroring torch semantics."""
    H = HIDDEN
    x = jnp.transpose(x_bfs, (2, 0, 1)).astype(jnp.float32)
    seq, B, _ = x.shape
    h0 = jnp.zeros((B, H)); c0 = jnp.zeros((B, H))
    h1 = jnp.zeros((B, H)); c1 = jnp.zeros((B, H))
    outs = []
    for t in range(seq):
        g = x[t] @ params["wih0"] + h0 @ params["whh0"] + params["b0"]
        i, f, gg, o = (_sigmoid(g[:, :H]), _sigmoid(g[:, H:2 * H]),
                       jnp.tanh(g[:, 2 * H:3 * H]), _sigmoid(g[:, 3 * H:]))
        c0 = f * c0 + i * gg
        h0 = o * jnp.tanh(c0)
        g = h0 @ params["wih1"] + h1 @ params["whh1"] + params["b1"]
        i, f, gg, o = (_sigmoid(g[:, :H]), _sigmoid(g[:, H:2 * H]),
                       jnp.tanh(g[:, 2 * H:3 * H]), _sigmoid(g[:, 3 * H:]))
        c1 = f * c1 + i * gg
        h1 = o * jnp.tanh(c1)
        outs.append(_sigmoid(h1 @ params["wm"] + params["bm"]))
    return jnp.stack(outs).reshape(-1)


def init_params(key, n_features):
    """Deterministic params. Shapes follow torch.nn.LSTM/Linear; matrices are
    stored pre-transposed so the kernel does x @ W (row-major matmul)."""
    H = HIDDEN
    ks = jax.random.split(key, 10)
    scale = 1.0 / jnp.sqrt(H)
    u = lambda k, shape: jax.random.uniform(k, shape, jnp.float32, -scale, scale)
    return {
        # layer 0: torch weight_ih_l0 is (4H, F) -> transposed to (F, 4H)
        "wih0": u(ks[0], (n_features, 4 * H)),
        "whh0": u(ks[1], (H, 4 * H)),
        "b0": (u(ks[2], (1, 4 * H)) + u(ks[3], (1, 4 * H))),  # b_ih + b_hh
        # layer 1: torch weight_ih_l1 is (4H, H)
        "wih1": u(ks[4], (H, 4 * H)),
        "whh1": u(ks[5], (H, 4 * H)),
        "b1": (u(ks[6], (1, 4 * H)) + u(ks[7], (1, 4 * H))),
        # mlp1: torch Linear(32, 1) weight (1, 32) -> transposed to (32, 1)
        "wm": u(ks[8], (H, 1)),
        "bm": u(ks[9], (1, 1)),
    }


if __name__ == "__main__":
    batch, n_features, seq = 2, 4, 8
    key = jax.random.PRNGKey(0)
    kx, kp = jax.random.split(key)
    x = jax.random.normal(kx, (batch, n_features, seq), jnp.float32)
    params = init_params(kp, n_features)

    out = jax.block_until_ready(lstm_model_forward(x, params))
    ref = jax.block_until_ready(ref_forward(x, params))

    assert out.shape == (seq * batch,)
    assert jnp.allclose(out, ref, atol=1e-5, rtol=1e-5), (out, ref)
    print("KERNEL_OK")
</pallas_src>

<mosaic_0001>
module attributes {stable_mosaic.version = 11 : i64} {
  func.func @lstm_kernel(%arg0: i32, %arg1: memref<16x4xf32, #tpu.memory_space<vmem>>, %arg2: memref<4x128xf32, #tpu.memory_space<vmem>>, %arg3: memref<32x128xf32, #tpu.memory_space<vmem>>, %arg4: memref<1x128xf32, #tpu.memory_space<vmem>>, %arg5: memref<32x128xf32, #tpu.memory_space<vmem>>, %arg6: memref<32x128xf32, #tpu.memory_space<vmem>>, %arg7: memref<1x128xf32, #tpu.memory_space<vmem>>, %arg8: memref<32x1xf32, #tpu.memory_space<vmem>>, %arg9: memref<1x1xf32, #tpu.memory_space<vmem>>, %arg10: memref<16x1xf32, #tpu.memory_space<vmem>>, %arg11: memref<4x2x32xf32, #tpu.memory_space<vmem>>, %arg12: memref<16x128xf32, #tpu.memory_space<vmem>>, %arg13: memref<16x32xf32, #tpu.memory_space<vmem>>, %arg14: memref<16x32xf32, #tpu.memory_space<vmem>>) attributes {dimension_semantics = [#tpu.dimension_semantics<arbitrary>], iteration_bounds = array<i64: 1>, scalar_prefetch = 0 : i64, scratch_operands = 4 : i64, tpu.core_type = #tpu.core_type<tc>, window_params = [{transform_indices = @transform_0, window_bounds = array<i64: 16, 4>}, {pipeline_mode = #tpu.pipeline_mode<synchronous>, transform_indices = @transform_1, window_bounds = array<i64: 4, 128>}, {pipeline_mode = #tpu.pipeline_mode<synchronous>, transform_indices = @transform_2, window_bounds = array<i64: 32, 128>}, {pipeline_mode = #tpu.pipeline_mode<synchronous>, transform_indices = @transform_3, window_bounds = array<i64: 1, 128>}, {pipeline_mode = #tpu.pipeline_mode<synchronous>, transform_indices = @transform_4, window_bounds = array<i64: 32, 128>}, {pipeline_mode = #tpu.pipeline_mode<synchronous>, transform_indices = @transform_5, window_bounds = array<i64: 32, 128>}, {pipeline_mode = #tpu.pipeline_mode<synchronous>, transform_indices = @transform_6, window_bounds = array<i64: 1, 128>}, {pipeline_mode = #tpu.pipeline_mode<synchronous>, transform_indices = @transform_7, window_bounds = array<i64: 32, 1>}, {pipeline_mode = #tpu.pipeline_mode<synchronous>, transform_indices = @transform_8, window_bounds = array<i64: 1, 1>}, {transform_indices = @transform_9, window_bounds = array<i64: 16, 1>}]} {
    %c0_i32 = arith.constant 0 : i32
    %0 = arith.cmpi eq, %arg0, %c0_i32 : i32
    %1 = arith.extui %0 : i1 to i32
    %c0_i32_0 = arith.constant 0 : i32
    %2 = arith.cmpi ne, %1, %c0_i32_0 : i32
    scf.if %2 {
      %cst_174 = arith.constant 0.000000e+00 : f32
      %579 = vector.broadcast %cst_174 : f32 to vector<4x2x32xf32>
      %c0_175 = arith.constant 0 : index
      %c0_176 = arith.constant 0 : index
      %c0_177 = arith.constant 0 : index
      %580 = vector.load %arg11[%c0_175, %c0_176, %c0_177] : memref<4x2x32xf32, #tpu.memory_space<vmem>>, vector<4x2x32xf32>
      tpu.vector_store %arg11[%c0_175, %c0_176, %c0_177], %579 {strides = array<i32>} : memref<4x2x32xf32, #tpu.memory_space<vmem>>, vector<4x2x32xf32>,
    } else {
    }
    %c0 = arith.constant 0 : index
    %c0_1 = arith.constant 0 : index
    %3 = vector.load %arg3[%c0, %c0_1] : memref<32x128xf32, #tpu.memory_space<vmem>>, vector<32x128xf32>
    %c0_2 = arith.constant 0 : index
    %c0_3 = arith.constant 0 : index
    %4 = vector.load %arg6[%c0_2, %c0_3] : memref<32x128xf32, #tpu.memory_space<vmem>>, vector<32x128xf32>
    %c0_4 = arith.constant 0 : index
    %c0_5 = arith.constant 0 : index
    %5 = vector.load %arg1[%c0_4, %c0_5] : memref<16x4xf32, #tpu.memory_space<vmem>>, vector<16x4xf32>
    %c0_6 = arith.constant 0 : index
    %c0_7 = arith.constant 0 : index
    %6 = vector.load %arg2[%c0_6, %c0_7] : memref<4x128xf32, #tpu.memory_space<vmem>>, vector<4x128xf32>
    %cst = arith.constant dense<0.000000e+00> : vector<16x128xf32>
    %7 = tpu.matmul %5, %6, %cst {dimension_numbers = #tpu.dot_dimension_numbers<[1], [0], [0], [1], [0, 0, 1, 1], [], []>} : vector<16x4xf32>, vector<4x128xf32>, vector<16x128xf32> -> vector<16x128xf32>
    %c0_8 = arith.constant 0 : index
    %c0_9 = arith.constant 0 : index
    %8 = vector.load %arg4[%c0_8, %c0_9] : memref<1x128xf32, #tpu.memory_space<vmem>>, vector<1x128xf32>
    %9 = vector.broadcast %8 : vector<1x128xf32> to vector<16x128xf32>
    %10 = arith.addf %7, %9 : vector<16x128xf32>
    %c0_10 = arith.constant 0 : index
    %c0_11 = arith.constant 0 : index
    %11 = vector.load %arg12[%c0_10, %c0_11] : memref<16x128xf32, #tpu.memory_space<vmem>>, vector<16x128xf32>
    tpu.vector_store %arg12[%c0_10, %c0_11], %10 {strides = array<i32>} : memref<16x128xf32, #tpu.memory_space<vmem>>, vector<16x128xf32>,
    %c0_12 = arith.constant 0 : index
    %c0_13 = arith.constant 0 : index
    %c0_14 = arith.constant 0 : index
    %12 = vector.load %arg11[%c0_12, %c0_13, %c0_14] : memref<4x2x32xf32, #tpu.memory_space<vmem>>, vector<1x2x32xf32>
    %13 = vector.shape_cast %12 : vector<1x2x32xf32> to vector<2x32xf32>
    %c1 = arith.constant 1 : index
    %c0_15 = arith.constant 0 : index
    %c0_16 = arith.constant 0 : index
    %14 = vector.load %arg11[%c1, %c0_15, %c0_16] : memref<4x2x32xf32, #tpu.memory_space<vmem>>, vector<1x2x32xf32>
    %15 = vector.shape_cast %14 : vector<1x2x32xf32> to vector<2x32xf32>
    %c0_i32_17 = arith.constant 0 : i32
    %c2_i32 = arith.constant 2 : i32
    %16 = arith.muli %c0_i32_17, %c2_i32 : i32
    %17 = tpu.assume_multiple %16, 2 : i32
    %18 = arith.index_cast %17 : i32 to index
    %c0_18 = arith.constant 0 : index
    %19 = vector.load %arg12[%18, %c0_18] : memref<16x128xf32, #tpu.memory_space<vmem>>, vector<2x128xf32>
    %cst_19 = arith.constant dense<0.000000e+00> : vector<2x128xf32>
    %20 = tpu.matmul %13, %3, %cst_19 {dimension_numbers = #tpu.dot_dimension_numbers<[1], [0], [0], [1], [0, 0, 1, 1], [], []>} : vector<2x32xf32>, vector<32x128xf32>, vector<2x128xf32> -> vector<2x128xf32>
    %21 = arith.addf %19, %20 : vector<2x128xf32>
    %22 = vector.extract_strided_slice %21 {offsets = [0, 0], sizes = [2, 32], strides = [1, 1]} : vector<2x128xf32> to vector<2x32xf32>
    %23 = arith.negf %22 : vector<2x32xf32>
    %24 = math.exp %23 : vector<2x32xf32>
    %cst_20 = arith.constant 1.000000e+00 : f32
    %25 = vector.broadcast %cst_20 : f32 to vector<2x32xf32>
    %26 = arith.addf %25, %24 : vector<2x32xf32>
    %27 = arith.divf %25, %26 : vector<2x32xf32>
    %28 = vector.extract_strided_slice %21 {offsets = [0, 32], sizes = [2, 32], strides = [1, 1]} : vector<2x128xf32> to vector<2x32xf32>
    %29 = arith.negf %28 : vector<2x32xf32>
    %30 = math.exp %29 : vector<2x32xf32>
    %cst_21 = arith.constant 1.000000e+00 : f32
    %31 = vector.broadcast %cst_21 : f32 to vector<2x32xf32>
    %32 = arith.addf %31, %30 : vector<2x32xf32>
    %33 = arith.divf %31, %32 : vector<2x32xf32>
    %34 = vector.extract_strided_slice %21 {offsets = [0, 64], sizes = [2, 32], strides = [1, 1]} : vector<2x128xf32> to vector<2x32xf32>
    %35 = math.tanh %34 : vector<2x32xf32>
    %36 = vector.extract_strided_slice %21 {offsets = [0, 96], sizes = [2, 32], strides = [1, 1]} : vector<2x128xf32> to vector<2x32xf32>
    %37 = arith.negf %36 : vector<2x32xf32>
    %38 = math.exp %37 : vector<2x32xf32>
    %cst_22 = arith.constant 1.000000e+00 : f32
    %39 = vector.broadcast %cst_22 : f32 to vector<2x32xf32>
    %40 = arith.addf %39, %38 : vector<2x32xf32>
    %41 = arith.divf %39, %40 : vector<2x32xf32>
    %42 = arith.mulf %33, %15 : vector<2x32xf32>
    %43 = arith.mulf %27, %35 : vector<2x32xf32>
    %44 = arith.addf %42, %43 : vector<2x32xf32>
    %45 = math.tanh %44 : vector<2x32xf32>
    %46 = arith.mulf %41, %45 : vector<2x32xf32>
    %47 = arith.index_cast %17 : i32 to index
    %c0_23 = arith.constant 0 : index
    %48 = vector.load %arg13[%47, %c0_23] : memref<16x32xf32, #tpu.memory_space<vmem>>, vector<2x32xf32>
    tpu.vector_store %arg13[%47, %c0_23], %46 {strides = array<i32>} : memref<16x32xf32, #tpu.memory_space<vmem>>, vector<2x32xf32>,
    %c1_i32 = arith.constant 1 : i32
    %c2_i32_24 = arith.constant 2 : i32
    %49 = arith.muli %c1_i32, %c2_i32_24 : i32
    %50 = tpu.assume_multiple %49, 2 : i32
    %51 = arith.index_cast %50 : i32 to index
    %c0_25 = arith.constant 0 : index
    %52 = vector.load %arg12[%51, %c0_25] : memref<16x128xf32, #tpu.memory_space<vmem>>, vector<2x128xf32>
    %cst_26 = arith.constant dense<0.000000e+00> : vector<2x128xf32>
    %53 = tpu.matmul %46, %3, %cst_26 {dimension_numbers = #tpu.dot_dimension_numbers<[1], [0], [0], [1], [0, 0, 1, 1], [], []>} : vector<2x32xf32>, vector<32x128xf32>, vector<2x128xf32> -> vector<2x128xf32>
    %54 = arith.addf %52, %53 : vector<2x128xf32>
    %55 = vector.extract_strided_slice %54 {offsets = [0, 0], sizes = [2, 32], strides = [1, 1]} : vector<2x128xf32> to vector<2x32xf32>
    %56 = arith.negf %55 : vector<2x32xf32>
    %57 = math.exp %56 : vector<2x32xf32>
    %cst_27 = arith.constant 1.000000e+00 : f32
    %58 = vector.broadcast %cst_27 : f32 to vector<2x32xf32>
    %59 = arith.addf %58, %57 : vector<2x32xf32>
    %60 = arith.divf %58, %59 : vector<2x32xf32>
    %61 = vector.extract_strided_slice %54 {offsets = [0, 32], sizes = [2, 32], strides = [1, 1]} : vector<2x128xf32> to vector<2x32xf32>
    %62 = arith.negf %61 : vector<2x32xf32>
    %63 = math.exp %62 : vector<2x32xf32>
    %cst_28 = arith.constant 1.000000e+00 : f32
    %64 = vector.broadcast %cst_28 : f32 to vector<2x32xf32>
    %65 = arith.addf %64, %63 : vector<2x32xf32>
    %66 = arith.divf %64, %65 : vector<2x32xf32>
    %67 = vector.extract_strided_slice %54 {offsets = [0, 64], sizes = [2, 32], strides = [1, 1]} : vector<2x128xf32> to vector<2x32xf32>
    %68 = math.tanh %67 : vector<2x32xf32>
    %69 = vector.extract_strided_slice %54 {offsets = [0, 96], sizes = [2, 32], strides = [1, 1]} : vector<2x128xf32> to vector<2x32xf32>
    %70 = arith.negf %69 : vector<2x32xf32>
    %71 = math.exp %70 : vector<2x32xf32>
    %cst_29 = arith.constant 1.000000e+00 : f32
    %72 = vector.broadcast %cst_29 : f32 to vector<2x32xf32>
    %73 = arith.addf %72, %71 : vector<2x32xf32>
    %74 = arith.divf %72, %73 : vector<2x32xf32>
    %75 = arith.mulf %66, %44 : vector<2x32xf32>
    %76 = arith.mulf %60, %68 : vector<2x32xf32>
    %77 = arith.addf %75, %76 : vector<2x32xf32>
    %78 = math.tanh %77 : vector<2x32xf32>
    %79 = arith.mulf %74, %78 : vector<2x32xf32>
    %80 = arith.index_cast %50 : i32 to index
    %c0_30 = arith.constant 0 : index
    %81 = vector.load %arg13[%80, %c0_30] : memref<16x32xf32, #tpu.memory_space<vmem>>, vector<2x32xf32>
    tpu.vector_store %arg13[%80, %c0_30], %79 {strides = array<i32>} : memref<16x32xf32, #tpu.memory_space<vmem>>, vector<2x32xf32>,
    %c2_i32_31 = arith.constant 2 : i32
    %c2_i32_32 = arith.constant 2 : i32
    %82 = arith.muli %c2_i32_31, %c2_i32_32 : i32
    %83 = tpu.assume_multiple %82, 2 : i32
    %84 = arith.index_cast %83 : i32 to index
    %c0_33 = arith.constant 0 : index
    %85 = vector.load %arg12[%84, %c0_33] : memref<16x128xf32, #tpu.memory_space<vmem>>, vector<2x128xf32>
    %cst_34 = arith.constant dense<0.000000e+00> : vector<2x128xf32>
    %86 = tpu.matmul %79, %3, %cst_34 {dimension_numbers = #tpu.dot_dimension_numbers<[1], [0], [0], [1], [0, 0, 1, 1], [], []>} : vector<2x32xf32>, vector<32x128xf32>, vector<2x128xf32> -> vector<2x128xf32>
    %87 = arith.addf %85, %86 : vector<2x128xf32>
    %88 = vector.extract_strided_slice %87 {offsets = [0, 0], sizes = [2, 32], strides = [1, 1]} : vector<2x128xf32> to vector<2x32xf32>
    %89 = arith.negf %88 : vector<2x32xf32>
    %90 = math.exp %89 : vector<2x32xf32>
    %cst_35 = arith.constant 1.000000e+00 : f32
    %91 = vector.broadcast %cst_35 : f32 to vector<2x32xf32>
    %92 = arith.addf %91, %90 : vector<2x32xf32>
    %93 = arith.divf %91, %92 : vector<2x32xf32>
    %94 = vector.extract_strided_slice %87 {offsets = [0, 32], sizes = [2, 32], strides = [1, 1]} : vector<2x128xf32> to vector<2x32xf32>
    %95 = arith.negf %94 : vector<2x32xf32>
    %96 = math.exp %95 : vector<2x32xf32>
    %cst_36 = arith.constant 1.000000e+00 : f32
    %97 = vector.broadcast %cst_36 : f32 to vector<2x32xf32>
    %98 = arith.addf %97, %96 : vector<2x32xf32>
    %99 = arith.divf %97, %98 : vector<2x32xf32>
    %100 = vector.extract_strided_slice %87 {offsets = [0, 64], sizes = [2, 32], strides = [1, 1]} : vector<2x128xf32> to vector<2x32xf32>
    %101 = math.tanh %100 : vector<2x32xf32>
    %102 = vector.extract_strided_slice %87 {offsets = [0, 96], sizes = [2, 32], strides = [1, 1]} : vector<2x128xf32> to vector<2x32xf32>
    %103 = arith.negf %102 : vector<2x32xf32>
    %104 = math.exp %103 : vector<2x32xf32>
    %cst_37 = arith.constant 1.000000e+00 : f32
    %105 = vector.broadcast %cst_37 : f32 to vector<2x32xf32>
    %106 = arith.addf %105, %104 : vector<2x32xf32>
    %107 = arith.divf %105, %106 : vector<2x32xf32>
    %108 = arith.mulf %99, %77 : vector<2x32xf32>
    %109 = arith.mulf %93, %101 : vector<2x32xf32>
    %110 = arith.addf %108, %109 : vector<2x32xf32>
    %111 = math.tanh %110 : vector<2x32xf32>
    %112 = arith.mulf %107, %111 : vector<2x32xf32>
    %113 = arith.index_cast %83 : i32 to index
    %c0_38 = arith.constant 0 : index
    %114 = vector.load %arg13[%113, %c0_38] : memref<16x32xf32, #tpu.memory_space<vmem>>, vector<2x32xf32>
    tpu.vector_store %arg13[%113, %c0_38], %112 {strides = array<i32>} : memref<16x32xf32, #tpu.memory_space<vmem>>, vector<2x32xf32>,
    %c3_i32 = arith.constant 3 : i32
    %c2_i32_39 = arith.constant 2 : i32
    %115 = arith.muli %c3_i32, %c2_i32_39 : i32
    %116 = tpu.assume_multiple %115, 2 : i32
    %117 = arith.index_cast %116 : i32 to index
    %c0_40 = arith.constant 0 : index
    %118 = vector.load %arg12[%117, %c0_40] : memref<16x128xf32, #tpu.memory_space<vmem>>, vector<2x128xf32>
    %cst_41 = arith.constant dense<0.000000e+00> : vector<2x128xf32>
    %119 = tpu.matmul %112, %3, %cst_41 {dimension_numbers = #tpu.dot_dimension_numbers<[1], [0], [0], [1], [0, 0, 1, 1], [], []>} : vector<2x32xf32>, vector<32x128xf32>, vector<2x128xf32> -> vector<2x128xf32>
    %120 = arith.addf %118, %119 : vector<2x128xf32>
    %121 = vector.extract_strided_slice %120 {offsets = [0, 0], sizes = [2, 32], strides = [1, 1]} : vector<2x128xf32> to vector<2x32xf32>
    %122 = arith.negf %121 : vector<2x32xf32>
    %123 = math.exp %122 : vector<2x32xf32>
    %cst_42 = arith.constant 1.000000e+00 : f32
    %124 = vector.broadcast %cst_42 : f32 to vector<2x32xf32>
    %125 = arith.addf %124, %123 : vector<2x32xf32>
    %126 = arith.divf %124, %125 : vector<2x32xf32>
    %127 = vector.extract_strided_slice %120 {offsets = [0, 32], sizes = [2, 32], strides = [1, 1]} : vector<2x128xf32> to vector<2x32xf32>
    %128 = arith.negf %127 : vector<2x32xf32>
    %129 = math.exp %128 : vector<2x32xf32>
    %cst_43 = arith.constant 1.000000e+00 : f32
    %130 = vector.broadcast %cst_43 : f32 to vector<2x32xf32>
    %131 = arith.addf %130, %129 : vector<2x32xf32>
    %132 = arith.divf %130, %131 : vector<2x32xf32>
    %133 = vector.extract_strided_slice %120 {offsets = [0, 64], sizes = [2, 32], strides = [1, 1]} : vector<2x128xf32> to vector<2x32xf32>
    %134 = math.tanh %133 : vector<2x32xf32>
    %135 = vector.extract_strided_slice %120 {offsets = [0, 96], sizes = [2, 32], strides = [1, 1]} : vector<2x128xf32> to vector<2x32xf32>
    %136 = arith.negf %135 : vector<2x32xf32>
    %137 = math.exp %136 : vector<2x32xf32>
    %cst_44 = arith.constant 1.000000e+00 : f32
    %138 = vector.broadcast %cst_44 : f32 to vector<2x32xf32>
    %139 = arith.addf %138, %137 : vector<2x32xf32>
    %140 = arith.divf %138, %139 : vector<2x32xf32>
    %141 = arith.mulf %132, %110 : vector<2x32xf32>
    %142 = arith.mulf %126, %134 : vector<2x32xf32>
    %143 = arith.addf %141, %142 : vector<2x32xf32>
    %144 = math.tanh %143 : vector<2x32xf32>
    %145 = arith.mulf %140, %144 : vector<2x32xf32>
    %146 = arith.index_cast %116 : i32 to index
    %c0_45 = arith.constant 0 : index
    %147 = vector.load %arg13[%146, %c0_45] : memref<16x32xf32, #tpu.memory_space<vmem>>, vector<2x32xf32>
    tpu.vector_store %arg13[%146, %c0_45], %145 {strides = array<i32>} : memref<16x32xf32, #tpu.memory_space<vmem>>, vector<2x32xf32>,
    %c4_i32 = arith.constant 4 : i32
    %c2_i32_46 = arith.constant 2 : i32
    %148 = arith.muli %c4_i32, %c2_i32_46 : i32
    %149 = tpu.assume_multiple %148, 2 : i32
    %150 = arith.index_cast %149 : i32 to index
    %c0_47 = arith.constant 0 : index
    %151 = vector.load %arg12[%150, %c0_47] : memref<16x128xf32, #tpu.memory_space<vmem>>, vector<2x128xf32>
    %cst_48 = arith.constant dense<0.000000e+00> : vector<2x128xf32>
    %152 = tpu.matmul %145, %3, %cst_48 {dimension_numbers = #tpu.dot_dimension_numbers<[1], [0], [0], [1], [0, 0, 1, 1], [], []>} : vector<2x32xf32>, vector<32x128xf32>, vector<2x128xf32> -> vector<2x128xf32>
    %153 = arith.addf %151, %152 : vector<2x128xf32>
    %154 = vector.extract_strided_slice %153 {offsets = [0, 0], sizes = [2, 32], strides = [1, 1]} : vector<2x128xf32> to vector<2x32xf32>
    %155 = arith.negf %154 : vector<2x32xf32>
    %156 = math.exp %155 : vector<2x32xf32>
    %cst_49 = arith.constant 1.000000e+00 : f32
    %157 = vector.broadcast %cst_49 : f32 to vector<2x32xf32>
    %158 = arith.addf %157, %156 : vector<2x32xf32>
    %159 = arith.divf %157, %158 : vector<2x32xf32>
    %160 = vector.extract_strided_slice %153 {offsets = [0, 32], sizes = [2, 32], strides = [1, 1]} : vector<2x128xf32> to vector<2x32xf32>
    %161 = arith.negf %160 : vector<2x32xf32>
    %162 = math.exp %161 : vector<2x32xf32>
    %cst_50 = arith.constant 1.000000e+00 : f32
    %163 = vector.broadcast %cst_50 : f32 to vector<2x32xf32>
    %164 = arith.addf %163, %162 : vector<2x32xf32>
    %165 = arith.divf %163, %164 : vector<2x32xf32>
    %166 = vector.extract_strided_slice %153 {offsets = [0, 64], sizes = [2, 32], strides = [1, 1]} : vector<2x128xf32> to vector<2x32xf32>
    %167 = math.tanh %166 : vector<2x32xf32>
    %168 = vector.extract_strided_slice %153 {offsets = [0, 96], sizes = [2, 32], strides = [1, 1]} : vector<2x128xf32> to vector<2x32xf32>
    %169 = arith.negf %168 : vector<2x32xf32>
    %170 = math.exp %169 : vector<2x32xf32>
    %cst_51 = arith.constant 1.000000e+00 : f32
    %171 = vector.broadcast %cst_51 : f32 to vector<2x32xf32>
    %172 = arith.addf %171, %170 : vector<2x32xf32>
    %173 = arith.divf %171, %172 : vector<2x32xf32>
    %174 = arith.mulf %165, %143 : vector<2x32xf32>
    %175 = arith.mulf %159, %167 : vector<2x32xf32>
    %176 = arith.addf %174, %175 : vector<2x32xf32>
    %177 = math.tanh %176 : vector<2x32xf32>
    %178 = arith.mulf %173, %177 : vector<2x32xf32>
    %179 = arith.index_cast %149 : i32 to index
    %c0_52 = arith.constant 0 : index
    %180 = vector.load %arg13[%179, %c0_52] : memref<16x32xf32, #tpu.memory_space<vmem>>, vector<2x32xf32>
    tpu.vector_store %arg13[%179, %c0_52], %178 {strides = array<i32>} : memref<16x32xf32, #tpu.memory_space<vmem>>, vector<2x32xf32>,
    %c5_i32 = arith.constant 5 : i32
    %c2_i32_53 = arith.constant 2 : i32
    %181 = arith.muli %c5_i32, %c2_i32_53 : i32
    %182 = tpu.assume_multiple %181, 2 : i32
    %183 = arith.index_cast %182 : i32 to index
    %c0_54 = arith.constant 0 : index
    %184 = vector.load %arg12[%183, %c0_54] : memref<16x128xf32, #tpu.memory_space<vmem>>, vector<2x128xf32>
    %cst_55 = arith.constant dense<0.000000e+00> : vector<2x128xf32>
    %185 = tpu.matmul %178, %3, %cst_55 {dimension_numbers = #tpu.dot_dimension_numbers<[1], [0], [0], [1], [0, 0, 1, 1], [], []>} : vector<2x32xf32>, vector<32x128xf32>, vector<2x128xf32> -> vector<2x128xf32>
    %186 = arith.addf %184, %185 : vector<2x128xf32>
    %187 = vector.extract_strided_slice %186 {offsets = [0, 0], sizes = [2, 32], strides = [1, 1]} : vector<2x128xf32> to vector<2x32xf32>
    %188 = arith.negf %187 : vector<2x32xf32>
    %189 = math.exp %188 : vector<2x32xf32>
    %cst_56 = arith.constant 1.000000e+00 : f32
    %190 = vector.broadcast %cst_56 : f32 to vector<2x32xf32>
    %191 = arith.addf %190, %189 : vector<2x32xf32>
    %192 = arith.divf %190, %191 : vector<2x32xf32>
    %193 = vector.extract_strided_slice %186 {offsets = [0, 32], sizes = [2, 32], strides = [1, 1]} : vector<2x128xf32> to vector<2x32xf32>
    %194 = arith.negf %193 : vector<2x32xf32>
    %195 = math.exp %194 : vector<2x32xf32>
    %cst_57 = arith.constant 1.000000e+00 : f32
    %196 = vector.broadcast %cst_57 : f32 to vector<2x32xf32>
    %197 = arith.addf %196, %195 : vector<2x32xf32>
    %198 = arith.divf %196, %197 : vector<2x32xf32>
    %199 = vector.extract_strided_slice %186 {offsets = [0, 64], sizes = [2, 32], strides = [1, 1]} : vector<2x128xf32> to vector<2x32xf32>
    %200 = math.tanh %199 : vector<2x32xf32>
    %201 = vector.extract_strided_slice %186 {offsets = [0, 96], sizes = [2, 32], strides = [1, 1]} : vector<2x128xf32> to vector<2x32xf32>
    %202 = arith.negf %201 : vector<2x32xf32>
    %203 = math.exp %202 : vector<2x32xf32>
    %cst_58 = arith.constant 1.000000e+00 : f32
    %204 = vector.broadcast %cst_58 : f32 to vector<2x32xf32>
    %205 = arith.addf %204, %203 : vector<2x32xf32>
    %206 = arith.divf %204, %205 : vector<2x32xf32>
    %207 = arith.mulf %198, %176 : vector<2x32xf32>
    %208 = arith.mulf %192, %200 : vector<2x32xf32>
    %209 = arith.addf %207, %208 : vector<2x32xf32>
    %210 = math.tanh %209 : vector<2x32xf32>
    %211 = arith.mulf %206, %210 : vector<2x32xf32>
    %212 = arith.index_cast %182 : i32 to index
    %c0_59 = arith.constant 0 : index
    %213 = vector.load %arg13[%212, %c0_59] : memref<16x32xf32, #tpu.memory_space<vmem>>, vector<2x32xf32>
    tpu.vector_store %arg13[%212, %c0_59], %211 {strides = array<i32>} : memref<16x32xf32, #tpu.memory_space<vmem>>, vector<2x32xf32>,
    %c6_i32 = arith.constant 6 : i32
    %c2_i32_60 = arith.constant 2 : i32
    %214 = arith.muli %c6_i32, %c2_i32_60 : i32
    %215 = tpu.assume_multiple %214, 2 : i32
    %216 = arith.index_cast %215 : i32 to index
    %c0_61 = arith.constant 0 : index
    %217 = vector.load %arg12[%216, %c0_61] : memref<16x128xf32, #tpu.memory_space<vmem>>, vector<2x128xf32>
    %cst_62 = arith.constant dense<0.000000e+00> : vector<2x128xf32>
    %218 = tpu.matmul %211, %3, %cst_62 {dimension_numbers = #tpu.dot_dimension_numbers<[1], [0], [0], [1], [0, 0, 1, 1], [], []>} : vector<2x32xf32>, vector<32x128xf32>, vector<2x128xf32> -> vector<2x128xf32>
    %219 = arith.addf %217, %218 : vector<2x128xf32>
    %220 = vector.extract_strided_slice %219 {offsets = [0, 0], sizes = [2, 32], strides = [1, 1]} : vector<2x128xf32> to vector<2x32xf32>
    %221 = arith.negf %220 : vector<2x32xf32>
    %222 = math.exp %221 : vector<2x32xf32>
    %cst_63 = arith.constant 1.000000e+00 : f32
    %223 = vector.broadcast %cst_63 : f32 to vector<2x32xf32>
    %224 = arith.addf %223, %222 : vector<2x32xf32>
    %225 = arith.divf %223, %224 : vector<2x32xf32>
    %226 = vector.extract_strided_slice %219 {offsets = [0, 32], sizes = [2, 32], strides = [1, 1]} : vector<2x128xf32> to vector<2x32xf32>
    %227 = arith.negf %226 : vector<2x32xf32>
    %228 = math.exp %227 : vector<2x32xf32>
    %cst_64 = arith.constant 1.000000e+00 : f32
    %229 = vector.broadcast %cst_64 : f32 to vector<2x32xf32>
    %230 = arith.addf %229, %228 : vector<2x32xf32>
    %231 = arith.divf %229, %230 : vector<2x32xf32>
    %232 = vector.extract_strided_slice %219 {offsets = [0, 64], sizes = [2, 32], strides = [1, 1]} : vector<2x128xf32> to vector<2x32xf32>
    %233 = math.tanh %232 : vector<2x32xf32>
    %234 = vector.extract_strided_slice %219 {offsets = [0, 96], sizes = [2, 32], strides = [1, 1]} : vector<2x128xf32> to vector<2x32xf32>
    %235 = arith.negf %234 : vector<2x32xf32>
    %236 = math.exp %235 : vector<2x32xf32>
    %cst_65 = arith.constant 1.000000e+00 : f32
    %237 = vector.broadcast %cst_65 : f32 to vector<2x32xf32>
    %238 = arith.addf %237, %236 : vector<2x32xf32>
    %239 = arith.divf %237, %238 : vector<2x32xf32>
    %240 = arith.mulf %231, %209 : vector<2x32xf32>
    %241 = arith.mulf %225, %233 : vector<2x32xf32>
    %242 = arith.addf %240, %241 : vector<2x32xf32>
    %243 = math.tanh %242 : vector<2x32xf32>
    %244 = arith.mulf %239, %243 : vector<2x32xf32>
    %245 = arith.index_cast %215 : i32 to index
    %c0_66 = arith.constant 0 : index
    %246 = vector.load %arg13[%245, %c0_66] : memref<16x32xf32, #tpu.memory_space<vmem>>, vector<2x32xf32>
    tpu.vector_store %arg13[%245, %c0_66], %244 {strides = array<i32>} : memref<16x32xf32, #tpu.memory_space<vmem>>, vector<2x32xf32>,
    %c7_i32 = arith.constant 7 : i32
    %c2_i32_67 = arith.constant 2 : i32
    %247 = arith.muli %c7_i32, %c2_i32_67 : i32
    %248 = tpu.assume_multiple %247, 2 : i32
    %249 = arith.index_cast %248 : i32 to index
    %c0_68 = arith.constant 0 : index
    %250 = vector.load %arg12[%249, %c0_68] : memref<16x128xf32, #tpu.memory_space<vmem>>, vector<2x128xf32>
    %cst_69 = arith.constant dense<0.000000e+00> : vector<2x128xf32>
    %251 = tpu.matmul %244, %3, %cst_69 {dimension_numbers = #tpu.dot_dimension_numbers<[1], [0], [0], [1], [0, 0, 1, 1], [], []>} : vector<2x32xf32>, vector<32x128xf32>, vector<2x128xf32> -> vector<2x128xf32>
    %252 = arith.addf %250, %251 : vector<2x128xf32>
    %253 = vector.extract_strided_slice %252 {offsets = [0, 0], sizes = [2, 32], strides = [1, 1]} : vector<2x128xf32> to vector<2x32xf32>
    %254 = arith.negf %253 : vector<2x32xf32>
    %255 = math.exp %254 : vector<2x32xf32>
    %cst_70 = arith.constant 1.000000e+00 : f32
    %256 = vector.broadcast %cst_70 : f32 to vector<2x32xf32>
    %257 = arith.addf %256, %255 : vector<2x32xf32>
    %258 = arith.divf %256, %257 : vector<2x32xf32>
    %259 = vector.extract_strided_slice %252 {offsets = [0, 32], sizes = [2, 32], strides = [1, 1]} : vector<2x128xf32> to vector<2x32xf32>
    %260 = arith.negf %259 : vector<2x32xf32>
    %261 = math.exp %260 : vector<2x32xf32>
    %cst_71 = arith.constant 1.000000e+00 : f32
    %262 = vector.broadcast %cst_71 : f32 to vector<2x32xf32>
    %263 = arith.addf %262, %261 : vector<2x32xf32>
    %264 = arith.divf %262, %263 : vector<2x32xf32>
    %265 = vector.extract_strided_slice %252 {offsets = [0, 64], sizes = [2, 32], strides = [1, 1]} : vector<2x128xf32> to vector<2x32xf32>
    %266 = math.tanh %265 : vector<2x32xf32>
    %267 = vector.extract_strided_slice %252 {offsets = [0, 96], sizes = [2, 32], strides = [1, 1]} : vector<2x128xf32> to vector<2x32xf32>
    %268 = arith.negf %267 : vector<2x32xf32>
    %269 = math.exp %268 : vector<2x32xf32>
    %cst_72 = arith.constant 1.000000e+00 : f32
    %270 = vector.broadcast %cst_72 : f32 to vector<2x32xf32>
    %271 = arith.addf %270, %269 : vector<2x32xf32>
    %272 = arith.divf %270, %271 : vector<2x32xf32>
    %273 = arith.mulf %264, %242 : vector<2x32xf32>
    %274 = arith.mulf %258, %266 : vector<2x32xf32>
    %275 = arith.addf %273, %274 : vector<2x32xf32>
    %276 = math.tanh %275 : vector<2x32xf32>
    %277 = arith.mulf %272, %276 : vector<2x32xf32>
    %278 = arith.index_cast %248 : i32 to index
    %c0_73 = arith.constant 0 : index
    %279 = vector.load %arg13[%278, %c0_73] : memref<16x32xf32, #tpu.memory_space<vmem>>, vector<2x32xf32>
    tpu.vector_store %arg13[%278, %c0_73], %277 {strides = array<i32>} : memref<16x32xf32, #tpu.memory_space<vmem>>, vector<2x32xf32>,
    %c8_i32 = arith.constant 8 : i32
    %c0_74 = arith.constant 0 : index
    %c0_75 = arith.constant 0 : index
    %280 = vector.load %arg13[%c0_74, %c0_75] : memref<16x32xf32, #tpu.memory_space<vmem>>, vector<16x32xf32>
    %c0_76 = arith.constant 0 : index
    %c0_77 = arith.constant 0 : index
    %281 = vector.load %arg5[%c0_76, %c0_77] : memref<32x128xf32, #tpu.memory_space<vmem>>, vector<32x128xf32>
    %cst_78 = arith.constant dense<0.000000e+00> : vector<16x128xf32>
    %282 = tpu.matmul %280, %281, %cst_78 {dimension_numbers = #tpu.dot_dimension_numbers<[1], [0], [0], [1], [0, 0, 1, 1], [], []>} : vector<16x32xf32>, vector<32x128xf32>, vector<16x128xf32> -> vector<16x128xf32>
    %c0_79 = arith.constant 0 : index
    %c0_80 = arith.constant 0 : index
    %283 = vector.load %arg7[%c0_79, %c0_80] : memref<1x128xf32, #tpu.memory_space<vmem>>, vector<1x128xf32>
    %284 = vector.broadcast %283 : vector<1x128xf32> to vector<16x128xf32>
    %285 = arith.addf %282, %284 : vector<16x128xf32>
    %c0_81 = arith.constant 0 : index
    %c0_82 = arith.constant 0 : index
    %286 = vector.load %arg12[%c0_81, %c0_82] : memref<16x128xf32, #tpu.memory_space<vmem>>, vector<16x128xf32>
    tpu.vector_store %arg12[%c0_81, %c0_82], %285 {strides = array<i32>} : memref<16x128xf32, #tpu.memory_space<vmem>>, vector<16x128xf32>,
    %c2 = arith.constant 2 : index
    %c0_83 = arith.constant 0 : index
    %c0_84 = arith.constant 0 : index
    %287 = vector.load %arg11[%c2, %c0_83, %c0_84] : memref<4x2x32xf32, #tpu.memory_space<vmem>>, vector<1x2x32xf32>
    %288 = vector.shape_cast %287 : vector<1x2x32xf32> to vector<2x32xf32>
    %c3 = arith.constant 3 : index
    %c0_85 = arith.constant 0 : index
    %c0_86 = arith.constant 0 : index
    %289 = vector.load %arg11[%c3, %c0_85, %c0_86] : memref<4x2x32xf32, #tpu.memory_space<vmem>>, vector<1x2x32xf32>
    %290 = vector.shape_cast %289 : vector<1x2x32xf32> to vector<2x32xf32>
    %c0_i32_87 = arith.constant 0 : i32
    %c2_i32_88 = arith.constant 2 : i32
    %291 = arith.muli %c0_i32_87, %c2_i32_88 : i32
    %292 = tpu.assume_multiple %291, 2 : i32
    %293 = arith.index_cast %292 : i32 to index
    %c0_89 = arith.constant 0 : index
    %294 = vector.load %arg12[%293, %c0_89] : memref<16x128xf32, #tpu.memory_space<vmem>>, vector<2x128xf32>
    %cst_90 = arith.constant dense<0.000000e+00> : vector<2x128xf32>
    %295 = tpu.matmul %288, %4, %cst_90 {dimension_numbers = #tpu.dot_dimension_numbers<[1], [0], [0], [1], [0, 0, 1, 1], [], []>} : vector<2x32xf32>, vector<32x128xf32>, vector<2x128xf32> -> vector<2x128xf32>
    %296 = arith.addf %294, %295 : vector<2x128xf32>
    %297 = vector.extract_strided_slice %296 {offsets = [0, 0], sizes = [2, 32], strides = [1, 1]} : vector<2x128xf32> to vector<2x32xf32>
    %298 = arith.negf %297 : vector<2x32xf32>
    %299 = math.exp %298 : vector<2x32xf32>
    %cst_91 = arith.constant 1.000000e+00 : f32
    %300 = vector.broadcast %cst_91 : f32 to vector<2x32xf32>
    %301 = arith.addf %300, %299 : vector<2x32xf32>
    %302 = arith.divf %300, %301 : vector<2x32xf32>
    %303 = vector.extract_strided_slice %296 {offsets = [0, 32], sizes = [2, 32], strides = [1, 1]} : vector<2x128xf32> to vector<2x32xf32>
    %304 = arith.negf %303 : vector<2x32xf32>
    %305 = math.exp %304 : vector<2x32xf32>
    %cst_92 = arith.constant 1.000000e+00 : f32
    %306 = vector.broadcast %cst_92 : f32 to vector<2x32xf32>
    %307 = arith.addf %306, %305 : vector<2x32xf32>
    %308 = arith.divf %306, %307 : vector<2x32xf32>
    %309 = vector.extract_strided_slice %296 {offsets = [0, 64], sizes = [2, 32], strides = [1, 1]} : vector<2x128xf32> to vector<2x32xf32>
    %310 = math.tanh %309 : vector<2x32xf32>
    %311 = vector.extract_strided_slice %296 {offsets = [0, 96], sizes = [2, 32], strides = [1, 1]} : vector<2x128xf32> to vector<2x32xf32>
    %312 = arith.negf %311 : vector<2x32xf32>
    %313 = math.exp %312 : vector<2x32xf32>
    %cst_93 = arith.constant 1.000000e+00 : f32
    %314 = vector.broadcast %cst_93 : f32 to vector<2x32xf32>
    %315 = arith.addf %314, %313 : vector<2x32xf32>
    %316 = arith.divf %314, %315 : vector<2x32xf32>
    %317 = arith.mulf %308, %290 : vector<2x32xf32>
    %318 = arith.mulf %302, %310 : vector<2x32xf32>
    %319 = arith.addf %317, %318 : vector<2x32xf32>
    %320 = math.tanh %319 : vector<2x32xf32>
    %321 = arith.mulf %316, %320 : vector<2x32xf32>
    %322 = arith.index_cast %292 : i32 to index
    %c0_94 = arith.constant 0 : index
    %323 = vector.load %arg14[%322, %c0_94] : memref<16x32xf32, #tpu.memory_space<vmem>>, vector<2x32xf32>
    tpu.vector_store %arg14[%322, %c0_94], %321 {strides = array<i32>} : memref<16x32xf32, #tpu.memory_space<vmem>>, vector<2x32xf32>,
    %c1_i32_95 = arith.constant 1 : i32
    %c2_i32_96 = arith.constant 2 : i32
    %324 = arith.muli %c1_i32_95, %c2_i32_96 : i32
    %325 = tpu.assume_multiple %324, 2 : i32
    %326 = arith.index_cast %325 : i32 to index
    %c0_97 = arith.constant 0 : index
    %327 = vector.load %arg12[%326, %c0_97] : memref<16x128xf32, #tpu.memory_space<vmem>>, vector<2x128xf32>
    %cst_98 = arith.constant dense<0.000000e+00> : vector<2x128xf32>
    %328 = tpu.matmul %321, %4, %cst_98 {dimension_numbers = #tpu.dot_dimension_numbers<[1], [0], [0], [1], [0, 0, 1, 1], [], []>} : vector<2x32xf32>, vector<32x128xf32>, vector<2x128xf32> -> vector<2x128xf32>
    %329 = arith.addf %327, %328 : vector<2x128xf32>
    %330 = vector.extract_strided_slice %329 {offsets = [0, 0], sizes = [2, 32], strides = [1, 1]} : vector<2x128xf32> to vector<2x32xf32>
    %331 = arith.negf %330 : vector<2x32xf32>
    %332 = math.exp %331 : vector<2x32xf32>
    %cst_99 = arith.constant 1.000000e+00 : f32
    %333 = vector.broadcast %cst_99 : f32 to vector<2x32xf32>
    %334 = arith.addf %333, %332 : vector<2x32xf32>
    %335 = arith.divf %333, %334 : vector<2x32xf32>
    %336 = vector.extract_strided_slice %329 {offsets = [0, 32], sizes = [2, 32], strides = [1, 1]} : vector<2x128xf32> to vector<2x32xf32>
    %337 = arith.negf %336 : vector<2x32xf32>
    %338 = math.exp %337 : vector<2x32xf32>
    %cst_100 = arith.constant 1.000000e+00 : f32
    %339 = vector.broadcast %cst_100 : f32 to vector<2x32xf32>
    %340 = arith.addf %339, %338 : vector<2x32xf32>
    %341 = arith.divf %339, %340 : vector<2x32xf32>
    %342 = vector.extract_strided_slice %329 {offsets = [0, 64], sizes = [2, 32], strides = [1, 1]} : vector<2x128xf32> to vector<2x32xf32>
    %343 = math.tanh %342 : vector<2x32xf32>
    %344 = vector.extract_strided_slice %329 {offsets = [0, 96], sizes = [2, 32], strides = [1, 1]} : vector<2x128xf32> to vector<2x32xf32>
    %345 = arith.negf %344 : vector<2x32xf32>
    %346 = math.exp %345 : vector<2x32xf32>
    %cst_101 = arith.constant 1.000000e+00 : f32
    %347 = vector.broadcast %cst_101 : f32 to vector<2x32xf32>
    %348 = arith.addf %347, %346 : vector<2x32xf32>
    %349 = arith.divf %347, %348 : vector<2x32xf32>
    %350 = arith.mulf %341, %319 : vector<2x32xf32>
    %351 = arith.mulf %335, %343 : vector<2x32xf32>
    %352 = arith.addf %350, %351 : vector<2x32xf32>
    %353 = math.tanh %352 : vector<2x32xf32>
    %354 = arith.mulf %349, %353 : vector<2x32xf32>
    %355 = arith.index_cast %325 : i32 to index
    %c0_102 = arith.constant 0 : index
    %356 = vector.load %arg14[%355, %c0_102] : memref<16x32xf32, #tpu.memory_space<vmem>>, vector<2x32xf32>
    tpu.vector_store %arg14[%355, %c0_102], %354 {strides = array<i32>} : memref<16x32xf32, #tpu.memory_space<vmem>>, vector<2x32xf32>,
    %c2_i32_103 = arith.constant 2 : i32
    %c2_i32_104 = arith.constant 2 : i32
    %357 = arith.muli %c2_i32_103, %c2_i32_104 : i32
    %358 = tpu.assume_multiple %357, 2 : i32
    %359 = arith.index_cast %358 : i32 to index
    %c0_105 = arith.constant 0 : index
    %360 = vector.load %arg12[%359, %c0_105] : memref<16x128xf32, #tpu.memory_space<vmem>>, vector<2x128xf32>
    %cst_106 = arith.constant dense<0.000000e+00> : vector<2x128xf32>
    %361 = tpu.matmul %354, %4, %cst_106 {dimension_numbers = #tpu.dot_dimension_numbers<[1], [0], [0], [1], [0, 0, 1, 1], [], []>} : vector<2x32xf32>, vector<32x128xf32>, vector<2x128xf32> -> vector<2x128xf32>
    %362 = arith.addf %360, %361 : vector<2x128xf32>
    %363 = vector.extract_strided_slice %362 {offsets = [0, 0], sizes = [2, 32], strides = [1, 1]} : vector<2x128xf32> to vector<2x32xf32>
    %364 = arith.negf %363 : vector<2x32xf32>
    %365 = math.exp %364 : vector<2x32xf32>
    %cst_107 = arith.constant 1.000000e+00 : f32
    %366 = vector.broadcast %cst_107 : f32 to vector<2x32xf32>
    %367 = arith.addf %366, %365 : vector<2x32xf32>
    %368 = arith.divf %366, %367 : vector<2x32xf32>
    %369 = vector.extract_strided_slice %362 {offsets = [0, 32], sizes = [2, 32], strides = [1, 1]} : vector<2x128xf32> to vector<2x32xf32>
    %370 = arith.negf %369 : vector<2x32xf32>
    %371 = math.exp %370 : vector<2x32xf32>
    %cst_108 = arith.constant 1.000000e+00 : f32
    %372 = vector.broadcast %cst_108 : f32 to vector<2x32xf32>
    %373 = arith.addf %372, %371 : vector<2x32xf32>
    %374 = arith.divf %372, %373 : vector<2x32xf32>
    %375 = vector.extract_strided_slice %362 {offsets = [0, 64], sizes = [2, 32], strides = [1, 1]} : vector<2x128xf32> to vector<2x32xf32>
    %376 = math.tanh %375 : vector<2x32xf32>
    %377 = vector.extract_strided_slice %362 {offsets = [0, 96], sizes = [2, 32], strides = [1, 1]} : vector<2x128xf32> to vector<2x32xf32>
    %378 = arith.negf %377 : vector<2x32xf32>
    %379 = math.exp %378 : vector<2x32xf32>
    %cst_109 = arith.constant 1.000000e+00 : f32
    %380 = vector.broadcast %cst_109 : f32 to vector<2x32xf32>
    %381 = arith.addf %380, %379 : vector<2x32xf32>
    %382 = arith.divf %380, %381 : vector<2x32xf32>
    %383 = arith.mulf %374, %352 : vector<2x32xf32>
    %384 = arith.mulf %368, %376 : vector<2x32xf32>
    %385 = arith.addf %383, %384 : vector<2x32xf32>
    %386 = math.tanh %385 : vector<2x32xf32>
    %387 = arith.mulf %382, %386 : vector<2x32xf32>
    %388 = arith.index_cast %358 : i32 to index
    %c0_110 = arith.constant 0 : index
    %389 = vector.load %arg14[%388, %c0_110] : memref<16x32xf32, #tpu.memory_space<vmem>>, vector<2x32xf32>
    tpu.vector_store %arg14[%388, %c0_110], %387 {strides = array<i32>} : memref<16x32xf32, #tpu.memory_space<vmem>>, vector<2x32xf32>,
    %c3_i32_111 = arith.constant 3 : i32
    %c2_i32_112 = arith.constant 2 : i32
    %390 = arith.muli %c3_i32_111, %c2_i32_112 : i32
    %391 = tpu.assume_multiple %390, 2 : i32
    %392 = arith.index_cast %391 : i32 to index
    %c0_113 = arith.constant 0 : index
    %393 = vector.load %arg12[%392, %c0_113] : memref<16x128xf32, #tpu.memory_space<vmem>>, vector<2x128xf32>
    %cst_114 = arith.constant dense<0.000000e+00> : vector<2x128xf32>
    %394 = tpu.matmul %387, %4, %cst_114 {dimension_numbers = #tpu.dot_dimension_numbers<[1], [0], [0], [1], [0, 0, 1, 1], [], []>} : vector<2x32xf32>, vector<32x128xf32>, vector<2x128xf32> -> vector<2x128xf32>
    %395 = arith.addf %393, %394 : vector<2x128xf32>
    %396 = vector.extract_strided_slice %395 {offsets = [0, 0], sizes = [2, 32], strides = [1, 1]} : vector<2x128xf32> to vector<2x32xf32>
    %397 = arith.negf %396 : vector<2x32xf32>
    %398 = math.exp %397 : vector<2x32xf32>
    %cst_115 = arith.constant 1.000000e+00 : f32
    %399 = vector.broadcast %cst_115 : f32 to vector<2x32xf32>
    %400 = arith.addf %399, %398 : vector<2x32xf32>
    %401 = arith.divf %399, %400 : vector<2x32xf32>
    %402 = vector.extract_strided_slice %395 {offsets = [0, 32], sizes = [2, 32], strides = [1, 1]} : vector<2x128xf32> to vector<2x32xf32>
    %403 = arith.negf %402 : vector<2x32xf32>
    %404 = math.exp %403 : vector<2x32xf32>
    %cst_116 = arith.constant 1.000000e+00 : f32
    %405 = vector.broadcast %cst_116 : f32 to vector<2x32xf32>
    %406 = arith.addf %405, %404 : vector<2x32xf32>
    %407 = arith.divf %405, %406 : vector<2x32xf32>
    %408 = vector.extract_strided_slice %395 {offsets = [0, 64], sizes = [2, 32], strides = [1, 1]} : vector<2x128xf32> to vector<2x32xf32>
    %409 = math.tanh %408 : vector<2x32xf32>
    %410 = vector.extract_strided_slice %395 {offsets = [0, 96], sizes = [2, 32], strides = [1, 1]} : vector<2x128xf32> to vector<2x32xf32>
    %411 = arith.negf %410 : vector<2x32xf32>
    %412 = math.exp %411 : vector<2x32xf32>
    %cst_117 = arith.constant 1.000000e+00 : f32
    %413 = vector.broadcast %cst_117 : f32 to vector<2x32xf32>
    %414 = arith.addf %413, %412 : vector<2x32xf32>
    %415 = arith.divf %413, %414 : vector<2x32xf32>
    %416 = arith.mulf %407, %385 : vector<2x32xf32>
    %417 = arith.mulf %401, %409 : vector<2x32xf32>
    %418 = arith.addf %416, %417 : vector<2x32xf32>
    %419 = math.tanh %418 : vector<2x32xf32>
    %420 = arith.mulf %415, %419 : vector<2x32xf32>
    %421 = arith.index_cast %391 : i32 to index
    %c0_118 = arith.constant 0 : index
    %422 = vector.load %arg14[%421, %c0_118] : memref<16x32xf32, #tpu.memory_space<vmem>>, vector<2x32xf32>
    tpu.vector_store %arg14[%421, %c0_118], %420 {strides = array<i32>} : memref<16x32xf32, #tpu.memory_space<vmem>>, vector<2x32xf32>,
    %c4_i32_119 = arith.constant 4 : i32
    %c2_i32_120 = arith.constant 2 : i32
    %423 = arith.muli %c4_i32_119, %c2_i32_120 : i32
    %424 = tpu.assume_multiple %423, 2 : i32
    %425 = arith.index_cast %424 : i32 to index
    %c0_121 = arith.constant 0 : index
    %426 = vector.load %arg12[%425, %c0_121] : memref<16x128xf32, #tpu.memory_space<vmem>>, vector<2x128xf32>
    %cst_122 = arith.constant dense<0.000000e+00> : vector<2x128xf32>
    %427 = tpu.matmul %420, %4, %cst_122 {dimension_numbers = #tpu.dot_dimension_numbers<[1], [0], [0], [1], [0, 0, 1, 1], [], []>} : vector<2x32xf32>, vector<32x128xf32>, vector<2x128xf32> -> vector<2x128xf32>
    %428 = arith.addf %426, %427 : vector<2x128xf32>
    %429 = vector.extract_strided_slice %428 {offsets = [0, 0], sizes = [2, 32], strides = [1, 1]} : vector<2x128xf32> to vector<2x32xf32>
    %430 = arith.negf %429 : vector<2x32xf32>
    %431 = math.exp %430 : vector<2x32xf32>
    %cst_123 = arith.constant 1.000000e+00 : f32
    %432 = vector.broadcast %cst_123 : f32 to vector<2x32xf32>
    %433 = arith.addf %432, %431 : vector<2x32xf32>
    %434 = arith.divf %432, %433 : vector<2x32xf32>
    %435 = vector.extract_strided_slice %428 {offsets = [0, 32], sizes = [2, 32], strides = [1, 1]} : vector<2x128xf32> to vector<2x32xf32>
    %436 = arith.negf %435 : vector<2x32xf32>
    %437 = math.exp %436 : vector<2x32xf32>
    %cst_124 = arith.constant 1.000000e+00 : f32
    %438 = vector.broadcast %cst_124 : f32 to vector<2x32xf32>
    %439 = arith.addf %438, %437 : vector<2x32xf32>
    %440 = arith.divf %438, %439 : vector<2x32xf32>
    %441 = vector.extract_strided_slice %428 {offsets = [0, 64], sizes = [2, 32], strides = [1, 1]} : vector<2x128xf32> to vector<2x32xf32>
    %442 = math.tanh %441 : vector<2x32xf32>
    %443 = vector.extract_strided_slice %428 {offsets = [0, 96], sizes = [2, 32], strides = [1, 1]} : vector<2x128xf32> to vector<2x32xf32>
    %444 = arith.negf %443 : vector<2x32xf32>
    %445 = math.exp %444 : vector<2x32xf32>
    %cst_125 = arith.constant 1.000000e+00 : f32
    %446 = vector.broadcast %cst_125 : f32 to vector<2x32xf32>
    %447 = arith.addf %446, %445 : vector<2x32xf32>
    %448 = arith.divf %446, %447 : vector<2x32xf32>
    %449 = arith.mulf %440, %418 : vector<2x32xf32>
    %450 = arith.mulf %434, %442 : vector<2x32xf32>
    %451 = arith.addf %449, %450 : vector<2x32xf32>
    %452 = math.tanh %451 : vector<2x32xf32>
    %453 = arith.mulf %448, %452 : vector<2x32xf32>
    %454 = arith.index_cast %424 : i32 to index
    %c0_126 = arith.constant 0 : index
    %455 = vector.load %arg14[%454, %c0_126] : memref<16x32xf32, #tpu.memory_space<vmem>>, vector<2x32xf32>
    tpu.vector_store %arg14[%454, %c0_126], %453 {strides = array<i32>} : memref<16x32xf32, #tpu.memory_space<vmem>>, vector<2x32xf32>,
    %c5_i32_127 = arith.constant 5 : i32
    %c2_i32_128 = arith.constant 2 : i32
    %456 = arith.muli %c5_i32_127, %c2_i32_128 : i32
    %457 = tpu.assume_multiple %456, 2 : i32
    %458 = arith.index_cast %457 : i32 to index
    %c0_129 = arith.constant 0 : index
    %459 = vector.load %arg12[%458, %c0_129] : memref<16x128xf32, #tpu.memory_space<vmem>>, vector<2x128xf32>
    %cst_130 = arith.constant dense<0.000000e+00> : vector<2x128xf32>
    %460 = tpu.matmul %453, %4, %cst_130 {dimension_numbers = #tpu.dot_dimension_numbers<[1], [0], [0], [1], [0, 0, 1, 1], [], []>} : vector<2x32xf32>, vector<32x128xf32>, vector<2x128xf32> -> vector<2x128xf32>
    %461 = arith.addf %459, %460 : vector<2x128xf32>
    %462 = vector.extract_strided_slice %461 {offsets = [0, 0], sizes = [2, 32], strides = [1, 1]} : vector<2x128xf32> to vector<2x32xf32>
    %463 = arith.negf %462 : vector<2x32xf32>
    %464 = math.exp %463 : vector<2x32xf32>
    %cst_131 = arith.constant 1.000000e+00 : f32
    %465 = vector.broadcast %cst_131 : f32 to vector<2x32xf32>
    %466 = arith.addf %465, %464 : vector<2x32xf32>
    %467 = arith.divf %465, %466 : vector<2x32xf32>
    %468 = vector.extract_strided_slice %461 {offsets = [0, 32], sizes = [2, 32], strides = [1, 1]} : vector<2x128xf32> to vector<2x32xf32>
    %469 = arith.negf %468 : vector<2x32xf32>
    %470 = math.exp %469 : vector<2x32xf32>
    %cst_132 = arith.constant 1.000000e+00 : f32
    %471 = vector.broadcast %cst_132 : f32 to vector<2x32xf32>
    %472 = arith.addf %471, %470 : vector<2x32xf32>
    %473 = arith.divf %471, %472 : vector<2x32xf32>
    %474 = vector.extract_strided_slice %461 {offsets = [0, 64], sizes = [2, 32], strides = [1, 1]} : vector<2x128xf32> to vector<2x32xf32>
    %475 = math.tanh %474 : vector<2x32xf32>
    %476 = vector.extract_strided_slice %461 {offsets = [0, 96], sizes = [2, 32], strides = [1, 1]} : vector<2x128xf32> to vector<2x32xf32>
    %477 = arith.negf %476 : vector<2x32xf32>
    %478 = math.exp %477 : vector<2x32xf32>
    %cst_133 = arith.constant 1.000000e+00 : f32
    %479 = vector.broadcast %cst_133 : f32 to vector<2x32xf32>
    %480 = arith.addf %479, %478 : vector<2x32xf32>
    %481 = arith.divf %479, %480 : vector<2x32xf32>
    %482 = arith.mulf %473, %451 : vector<2x32xf32>
    %483 = arith.mulf %467, %475 : vector<2x32xf32>
    %484 = arith.addf %482, %483 : vector<2x32xf32>
    %485 = math.tanh %484 : vector<2x32xf32>
    %486 = arith.mulf %481, %485 : vector<2x32xf32>
    %487 = arith.index_cast %457 : i32 to index
    %c0_134 = arith.constant 0 : index
    %488 = vector.load %arg14[%487, %c0_134] : memref<16x32xf32, #tpu.memory_space<vmem>>, vector<2x32xf32>
    tpu.vector_store %arg14[%487, %c0_134], %486 {strides = array<i32>} : memref<16x32xf32, #tpu.memory_space<vmem>>, vector<2x32xf32>,
    %c6_i32_135 = arith.constant 6 : i32
    %c2_i32_136 = arith.constant 2 : i32
    %489 = arith.muli %c6_i32_135, %c2_i32_136 : i32
    %490 = tpu.assume_multiple %489, 2 : i32
    %491 = arith.index_cast %490 : i32 to index
    %c0_137 = arith.constant 0 : index
    %492 = vector.load %arg12[%491, %c0_137] : memref<16x128xf32, #tpu.memory_space<vmem>>, vector<2x128xf32>
    %cst_138 = arith.constant dense<0.000000e+00> : vector<2x128xf32>
    %493 = tpu.matmul %486, %4, %cst_138 {dimension_numbers = #tpu.dot_dimension_numbers<[1], [0], [0], [1], [0, 0, 1, 1], [], []>} : vector<2x32xf32>, vector<32x128xf32>, vector<2x128xf32> -> vector<2x128xf32>
    %494 = arith.addf %492, %493 : vector<2x128xf32>
    %495 = vector.extract_strided_slice %494 {offsets = [0, 0], sizes = [2, 32], strides = [1, 1]} : vector<2x128xf32> to vector<2x32xf32>
    %496 = arith.negf %495 : vector<2x32xf32>
    %497 = math.exp %496 : vector<2x32xf32>
    %cst_139 = arith.constant 1.000000e+00 : f32
    %498 = vector.broadcast %cst_139 : f32 to vector<2x32xf32>
    %499 = arith.addf %498, %497 : vector<2x32xf32>
    %500 = arith.divf %498, %499 : vector<2x32xf32>
    %501 = vector.extract_strided_slice %494 {offsets = [0, 32], sizes = [2, 32], strides = [1, 1]} : vector<2x128xf32> to vector<2x32xf32>
    %502 = arith.negf %501 : vector<2x32xf32>
    %503 = math.exp %502 : vector<2x32xf32>
    %cst_140 = arith.constant 1.000000e+00 : f32
    %504 = vector.broadcast %cst_140 : f32 to vector<2x32xf32>
    %505 = arith.addf %504, %503 : vector<2x32xf32>
    %506 = arith.divf %504, %505 : vector<2x32xf32>
    %507 = vector.extract_strided_slice %494 {offsets = [0, 64], sizes = [2, 32], strides = [1, 1]} : vector<2x128xf32> to vector<2x32xf32>
    %508 = math.tanh %507 : vector<2x32xf32>
    %509 = vector.extract_strided_slice %494 {offsets = [0, 96], sizes = [2, 32], strides = [1, 1]} : vector<2x128xf32> to vector<2x32xf32>
    %510 = arith.negf %509 : vector<2x32xf32>
    %511 = math.exp %510 : vector<2x32xf32>
    %cst_141 = arith.constant 1.000000e+00 : f32
    %512 = vector.broadcast %cst_141 : f32 to vector<2x32xf32>
    %513 = arith.addf %512, %511 : vector<2x32xf32>
    %514 = arith.divf %512, %513 : vector<2x32xf32>
    %515 = arith.mulf %506, %484 : vector<2x32xf32>
    %516 = arith.mulf %500, %508 : vector<2x32xf32>
    %517 = arith.addf %515, %516 : vector<2x32xf32>
    %518 = math.tanh %517 : vector<2x32xf32>
    %519 = arith.mulf %514, %518 : vector<2x32xf32>
    %520 = arith.index_cast %490 : i32 to index
    %c0_142 = arith.constant 0 : index
    %521 = vector.load %arg14[%520, %c0_142] : memref<16x32xf32, #tpu.memory_space<vmem>>, vector<2x32xf32>
    tpu.vector_store %arg14[%520, %c0_142], %519 {strides = array<i32>} : memref<16x32xf32, #tpu.memory_space<vmem>>, vector<2x32xf32>,
    %c7_i32_143 = arith.constant 7 : i32
    %c2_i32_144 = arith.constant 2 : i32
    %522 = arith.muli %c7_i32_143, %c2_i32_144 : i32
    %523 = tpu.assume_multiple %522, 2 : i32
    %524 = arith.index_cast %523 : i32 to index
    %c0_145 = arith.constant 0 : index
    %525 = vector.load %arg12[%524, %c0_145] : memref<16x128xf32, #tpu.memory_space<vmem>>, vector<2x128xf32>
    %cst_146 = arith.constant dense<0.000000e+00> : vector<2x128xf32>
    %526 = tpu.matmul %519, %4, %cst_146 {dimension_numbers = #tpu.dot_dimension_numbers<[1], [0], [0], [1], [0, 0, 1, 1], [], []>} : vector<2x32xf32>, vector<32x128xf32>, vector<2x128xf32> -> vector<2x128xf32>
    %527 = arith.addf %525, %526 : vector<2x128xf32>
    %528 = vector.extract_strided_slice %527 {offsets = [0, 0], sizes = [2, 32], strides = [1, 1]} : vector<2x128xf32> to vector<2x32xf32>
    %529 = arith.negf %528 : vector<2x32xf32>
    %530 = math.exp %529 : vector<2x32xf32>
    %cst_147 = arith.constant 1.000000e+00 : f32
    %531 = vector.broadcast %cst_147 : f32 to vector<2x32xf32>
    %532 = arith.addf %531, %530 : vector<2x32xf32>
    %533 = arith.divf %531, %532 : vector<2x32xf32>
    %534 = vector.extract_strided_slice %527 {offsets = [0, 32], sizes = [2, 32], strides = [1, 1]} : vector<2x128xf32> to vector<2x32xf32>
    %535 = arith.negf %534 : vector<2x32xf32>
    %536 = math.exp %535 : vector<2x32xf32>
    %cst_148 = arith.constant 1.000000e+00 : f32
    %537 = vector.broadcast %cst_148 : f32 to vector<2x32xf32>
    %538 = arith.addf %537, %536 : vector<2x32xf32>
    %539 = arith.divf %537, %538 : vector<2x32xf32>
    %540 = vector.extract_strided_slice %527 {offsets = [0, 64], sizes = [2, 32], strides = [1, 1]} : vector<2x128xf32> to vector<2x32xf32>
    %541 = math.tanh %540 : vector<2x32xf32>
    %542 = vector.extract_strided_slice %527 {offsets = [0, 96], sizes = [2, 32], strides = [1, 1]} : vector<2x128xf32> to vector<2x32xf32>
    %543 = arith.negf %542 : vector<2x32xf32>
    %544 = math.exp %543 : vector<2x32xf32>
    %cst_149 = arith.constant 1.000000e+00 : f32
    %545 = vector.broadcast %cst_149 : f32 to vector<2x32xf32>
    %546 = arith.addf %545, %544 : vector<2x32xf32>
    %547 = arith.divf %545, %546 : vector<2x32xf32>
    %548 = arith.mulf %539, %517 : vector<2x32xf32>
    %549 = arith.mulf %533, %541 : vector<2x32xf32>
    %550 = arith.addf %548, %549 : vector<2x32xf32>
    %551 = math.tanh %550 : vector<2x32xf32>
    %552 = arith.mulf %547, %551 : vector<2x32xf32>
    %553 = arith.index_cast %523 : i32 to index
    %c0_150 = arith.constant 0 : index
    %554 = vector.load %arg14[%553, %c0_150] : memref<16x32xf32, #tpu.memory_space<vmem>>, vector<2x32xf32>
    tpu.vector_store %arg14[%553, %c0_150], %552 {strides = array<i32>} : memref<16x32xf32, #tpu.memory_space<vmem>>, vector<2x32xf32>,
    %c8_i32_151 = arith.constant 8 : i32
    %c0_152 = arith.constant 0 : index
    %c0_153 = arith.constant 0 : index
    %c0_154 = arith.constant 0 : index
    %555 = vector.load %arg11[%c0_152, %c0_153, %c0_154] : memref<4x2x32xf32, #tpu.memory_space<vmem>>, vector<1x2x32xf32>
    %556 = vector.shape_cast %555 : vector<1x2x32xf32> to vector<2x32xf32>
    %557 = vector.shape_cast %277 : vector<2x32xf32> to vector<1x2x32xf32>
    tpu.vector_store %arg11[%c0_152, %c0_153, %c0_154], %557 {strides = array<i32>} : memref<4x2x32xf32, #tpu.memory_space<vmem>>, vector<1x2x32xf32>,
    %c1_155 = arith.constant 1 : index
    %c0_156 = arith.constant 0 : index
    %c0_157 = arith.constant 0 : index
    %558 = vector.load %arg11[%c1_155, %c0_156, %c0_157] : memref<4x2x32xf32, #tpu.memory_space<vmem>>, vector<1x2x32xf32>
    %559 = vector.shape_cast %558 : vector<1x2x32xf32> to vector<2x32xf32>
    %560 = vector.shape_cast %275 : vector<2x32xf32> to vector<1x2x32xf32>
    tpu.vector_store %arg11[%c1_155, %c0_156, %c0_157], %560 {strides = array<i32>} : memref<4x2x32xf32, #tpu.memory_space<vmem>>, vector<1x2x32xf32>,
    %c2_158 = arith.constant 2 : index
    %c0_159 = arith.constant 0 : index
    %c0_160 = arith.constant 0 : index
    %561 = vector.load %arg11[%c2_158, %c0_159, %c0_160] : memref<4x2x32xf32, #tpu.memory_space<vmem>>, vector<1x2x32xf32>
    %562 = vector.shape_cast %561 : vector<1x2x32xf32> to vector<2x32xf32>
    %563 = vector.shape_cast %552 : vector<2x32xf32> to vector<1x2x32xf32>
    tpu.vector_store %arg11[%c2_158, %c0_159, %c0_160], %563 {strides = array<i32>} : memref<4x2x32xf32, #tpu.memory_space<vmem>>, vector<1x2x32xf32>,
    %c3_161 = arith.constant 3 : index
    %c0_162 = arith.constant 0 : index
    %c0_163 = arith.constant 0 : index
    %564 = vector.load %arg11[%c3_161, %c0_162, %c0_163] : memref<4x2x32xf32, #tpu.memory_space<vmem>>, vector<1x2x32xf32>
    %565 = vector.shape_cast %564 : vector<1x2x32xf32> to vector<2x32xf32>
    %566 = vector.shape_cast %550 : vector<2x32xf32> to vector<1x2x32xf32>
    tpu.vector_store %arg11[%c3_161, %c0_162, %c0_163], %566 {strides = array<i32>} : memref<4x2x32xf32, #tpu.memory_space<vmem>>, vector<1x2x32xf32>,
    %c0_164 = arith.constant 0 : index
    %c0_165 = arith.constant 0 : index
    %567 = vector.load %arg14[%c0_164, %c0_165] : memref<16x32xf32, #tpu.memory_space<vmem>>, vector<16x32xf32>
    %c0_166 = arith.constant 0 : index
    %c0_167 = arith.constant 0 : index
    %568 = vector.load %arg8[%c0_166, %c0_167] : memref<32x1xf32, #tpu.memory_space<vmem>>, vector<32x1xf32>
    %cst_168 = arith.constant dense<0.000000e+00> : vector<16x1xf32>
    %569 = tpu.matmul %567, %568, %cst_168 {dimension_numbers = #tpu.dot_dimension_numbers<[1], [0], [0], [1], [0, 0, 1, 1], [], []>} : vector<16x32xf32>, vector<32x1xf32>, vector<16x1xf32> -> vector<16x1xf32>
    %c0_169 = arith.constant 0 : index
    %c0_170 = arith.constant 0 : index
    %570 = vector.load %arg9[%c0_169, %c0_170] : memref<1x1xf32, #tpu.memory_space<vmem>>, vector<1x1xf32>
    %571 = vector.broadcast %570 : vector<1x1xf32> to vector<16x1xf32>
    %572 = arith.addf %569, %571 : vector<16x1xf32>
    %573 = arith.negf %572 : vector<16x1xf32>
    %574 = math.exp %573 : vector<16x1xf32>
    %cst_171 = arith.constant 1.000000e+00 : f32
    %575 = vector.broadcast %cst_171 : f32 to vector<16x1xf32>
    %576 = arith.addf %575, %574 : vector<16x1xf32>
    %577 = arith.divf %575, %576 : vector<16x1xf32>
    %c0_172 = arith.constant 0 : index
    %c0_173 = arith.constant 0 : index
    %578 = vector.load %arg10[%c0_172, %c0_173] : memref<16x1xf32, #tpu.memory_space<vmem>>, vector<16x1xf32>
    tpu.vector_store %arg10[%c0_172, %c0_173], %577 {strides = array<i32>} : memref<16x1xf32, #tpu.memory_space<vmem>>, vector<16x1xf32>,
    return
  }
  func.func @transform_0(%arg0: i32) -> (i32, i32) {
    %c0_i32 = arith.constant 0 : i32
    %c0_i32_0 = arith.constant 0 : i32
    return %arg0, %c0_i32 : i32, i32
  }
  func.func @transform_1(%arg0: i32) -> (i32, i32) {
    %c0_i32 = arith.constant 0 : i32
    %c0_i32_0 = arith.constant 0 : i32
    %c0_i32_1 = arith.constant 0 : i32
    return %c0_i32, %c0_i32_0 : i32, i32
  }
  func.func @transform_2(%arg0: i32) -> (i32, i32) {
    %c0_i32 = arith.constant 0 : i32
    %c0_i32_0 = arith.constant 0 : i32
    %c0_i32_1 = arith.constant 0 : i32
    return %c0_i32, %c0_i32_0 : i32, i32
  }
  func.func @transform_3(%arg0: i32) -> (i32, i32) {
    %c0_i32 = arith.constant 0 : i32
    %c0_i32_0 = arith.constant 0 : i32
    %c0_i32_1 = arith.constant 0 : i32
    return %c0_i32, %c0_i32_0 : i32, i32
  }
  func.func @transform_4(%arg0: i32) -> (i32, i32) {
    %c0_i32 = arith.constant 0 : i32
    %c0_i32_0 = arith.constant 0 : i32
    %c0_i32_1 = arith.constant 0 : i32
    return %c0_i32, %c0_i32_0 : i32, i32
  }
  func.func @transform_5(%arg0: i32) -> (i32, i32) {
    %c0_i32 = arith.constant 0 : i32
    %c0_i32_0 = arith.constant 0 : i32
    %c0_i32_1 = arith.constant 0 : i32
    return %c0_i32, %c0_i32_0 : i32, i32
  }
  func.func @transform_6(%arg0: i32) -> (i32, i32) {
    %c0_i32 = arith.constant 0 : i32
    %c0_i32_0 = arith.constant 0 : i32
    %c0_i32_1 = arith.constant 0 : i32
    return %c0_i32, %c0_i32_0 : i32, i32
  }
  func.func @transform_7(%arg0: i32) -> (i32, i32) {
    %c0_i32 = arith.constant 0 : i32
    %c0_i32_0 = arith.constant 0 : i32
    %c0_i32_1 = arith.constant 0 : i32
    return %c0_i32, %c0_i32_0 : i32, i32
  }
  func.func @transform_8(%arg0: i32) -> (i32, i32) {
    %c0_i32 = arith.constant 0 : i32
    %c0_i32_0 = arith.constant 0 : i32
    %c0_i32_1 = arith.constant 0 : i32
    return %c0_i32, %c0_i32_0 : i32, i32
  }
  func.func @transform_9(%arg0: i32) -> (i32, i32) {
    %c0_i32 = arith.constant 0 : i32
    %c0_i32_0 = arith.constant 0 : i32
    return %arg0, %c0_i32 : i32, i32
  }
}

</mosaic_0001>

<bundles_post_ra>
// kernel: tpu_custom_call.1
= control target key start
LH: loop header
LB: loop body
LE: loop exit
PB: predicated region body
PF: predicated region fallthrough
CT: control target
= control target key end

     0   :  { %s1902_s0 = inlined_call_operand.vmem [shape: f32[16,4], index: 0, kind: input, shape index: {}]   ;;  %s1903_s1 = inlined_call_operand.vmem [shape: f32[4,128], index: 1, kind: input, shape index: {}]   ;;  %s1904_s2 = inlined_call_operand.vmem [shape: f32[32,128], index: 2, kind: input, shape index: {}]   ;;  %s1905_s3 = inlined_call_operand.vmem [shape: f32[1,128], index: 3, kind: input, shape index: {}]   ;;  %s1906_s4 = inlined_call_operand.hbm [shape: f32[32,128], index: 4, kind: input, shape index: {}]   ;;  %s1907_s5 = inlined_call_operand.hbm [shape: f32[32,128], index: 5, kind: input, shape index: {}]   ;;  %s1908_s6 = inlined_call_operand.vmem [shape: f32[1,128], index: 6, kind: input, shape index: {}]   ;;  %s1909_s7 = inlined_call_operand.vmem [shape: f32[32,1], index: 7, kind: input, shape index: {}]   ;;  %s1910_s8 = inlined_call_operand.<no memory space> [shape: f32[1,1], index: 8, kind: input, shape index: {}]   ;;  %s1911_s9 = inlined_call_operand.vmem [shape: f32[16,1], index: 9, kind: output, shape index: {}]  }
   0x1   :  { %v14_v0 = vstv %s1910_s8 }
   0x2   :  { %15 = vst [vmem:[#allocation6] sm:$0x1] %v14_v0 }
   0x3   :  { %16 = vsyncpa [#allocation8], 0  ;;  %s30_s13 = sshll.u32 %s1906_s4, 4  ;;  %s31_s13 = int_to_ptr.hbm [resolvable:$true] %s30_s13 }
   0x4   :  { %17 = vsyncpa [#allocation10], 0  ;;  %s1602_s14 = smov [#allocation7]   ;;  %s43_s18 = sshll.u32 %s1907_s5, 4  ;;  %s44_s18 = int_to_ptr.hbm [resolvable:$true] %s43_s18 }
   0x5   :  { %s32_s15 = sshll.u32 %s1602_s14, 4  ;;  %s1603_s19 = smov 128   ;;  %s33_s15 = int_to_ptr.vmem [resolvable:$true] %s32_s15 }
   0x6   :  { %s1604_s20 = smov 8   ;;  %s1605_s8 = smov [#allocation9]  }
   0x7   :  { %38 = dma.hbm_to_vmem [thread:$0]  %s31_s13, 512, %s33_s15, [#allocation8], %s1603_s19, %s1603_s19, %s1604_s20  }
   0x8   :  { %s45_s21 = sshll.u32 %s1605_s8, 4  ;;  %s46_s21 = int_to_ptr.vmem [resolvable:$true] %s45_s21 }
   0x9   :  { %51 = dma.hbm_to_vmem [thread:$0]  %s44_s18, 512, %s46_s21, [#allocation10], %s1603_s19, %s1603_s19, %s1604_s20  }
   0xa   :  { %1598 = dma.done.wait [#allocation8], 512  }
   0xb   :  { %1599 = vsyncadd [#allocation8], 4294966784 }
   0xc   :  { %1600 = dma.done.wait [#allocation10], 512  }
   0xd   :  { %1601 = vsyncadd [#allocation10], 4294966784  ;;  %vm70_vm0 = vcmask 254976   ;;  %v1606_v1 = vmov 0.0   ;;  %vm97_vm1 = vcmask 1043456   ;;  %vm90_vm2 = vcmask 31744  }
   0xe   :  { %71 = vst.msk [vmem:[#allocation2] sm:$0x3] %vm70_vm0, %v1606_v1  ;;  %v85_v2 = vld [vmem:[%s1903_s1] sm:$0xf]  ;;  %v84_v4 = vld [vmem:[%s1902_s0 + $0x8] sm:$0xff]  ;;  %v78_v5 = vld [vmem:[%s1904_s2 + $0x18] sm:$0xff] }
   0xf   :  { %72 = vst.msk [vmem:[#allocation2 + $0x2] sm:$0x3] %vm70_vm0, %v1606_v1  ;;  %v83_v3 = vld [vmem:[%s1902_s0] sm:$0xff]  ;;  %1361 = vmatpush.msk.msra.mxu0 %vm97_vm1, %v85_v2  ;;  %1402 = vmatpush.msk.msra.mxu1 %vm97_vm1, %v85_v2  ;;  %v77_v6 = vld [vmem:[%s1904_s2 + $0x10] sm:$0xff]  ;;  %v76_v7 = vld [vmem:[%s1904_s2 + $0x8] sm:$0xff]  ;;  %vm130_vm3 = vcmask 261120  }
  0x10   :  { %73 = vst.msk [vmem:[#allocation2 + $0x4] sm:$0x3] %vm70_vm0, %v1606_v1  ;;  %1362 = vmatmul.msk.f32.vlgmr.msra.gmra.mxu0 %vm90_vm2, %v83_v3  ;;  %1363 = vmatmul.msk.f32.vlgmr.msra.gmra.mxu1 %vm90_vm2, %v84_v4  ;;  %v75_v8 = vld [vmem:[%s1904_s2] sm:$0xff]  ;;  %s1607_s12 = smov 64   ;;  %s1608_s13 = smov 32  }
  0x11   :  { %74 = vst.msk [vmem:[#allocation2 + $0x6] sm:$0x3] %vm70_vm0, %v1606_v1  ;;  %146 = vmatpush.msrb.mxu1 %v78_v5  ;;  %218 = vmatpush.msra.mxu2 %v78_v5  ;;  %v1411_v10 = vld [vmem:[%s1905_s3] ss:$0 sm:$0xff]  ;;  %s1609_s4 = smov 96  }
  0x12   :  { %286 = vmatpush.msra.mxu3 %v78_v5  ;;  %558 = vmatpush.msrb.mxu0 %v78_v5 }
  0x13   :  { %147 = vmatpush.msrb.mxu1 %v77_v6  ;;  %219 = vmatpush.msra.mxu2 %v77_v6 }
  0x14   :  { %287 = vmatpush.msra.mxu3 %v77_v6  ;;  %559 = vmatpush.msrb.mxu0 %v77_v6 }
  0x15   :  { %148 = vmatpush.msrb.mxu1 %v76_v7  ;;  %v126_v9 = vld [vmem:[#allocation2] sm:$0x3]  ;;  %220 = vmatpush.msra.mxu2 %v76_v7 }
  0x16   :  { %288 = vmatpush.msra.mxu3 %v76_v7  ;;  %560 = vmatpush.msrb.mxu0 %v76_v7  ;;  %v128_v19 = vld [vmem:[#allocation2 + $0x2] sm:$0x3] }
  0x17   :  { %149 = vmatpush.msrb.mxu1 %v75_v8  ;;  %221 = vmatpush.msra.mxu2 %v75_v8 }
  0x18   :  { %1364 = vmatmul.msk.f32.vlgmr.msrb.gmra.mxu1 %vm130_vm3, %v126_v9  ;;  %289 = vmatpush.msra.mxu3 %v75_v8 }
  0x19   :  { %354 = vmatpush.msra.mxu1 %v78_v5  ;;  %422 = vmatpush.msrb.mxu2 %v78_v5 }
  0x1a   :  { %490 = vmatpush.msrb.mxu3 %v78_v5  ;;  %561 = vmatpush.msrb.mxu0 %v75_v8 }
  0x1b   :  { %355 = vmatpush.msra.mxu1 %v77_v6  ;;  %423 = vmatpush.msrb.mxu2 %v77_v6 }
  0x1c   :  { %491 = vmatpush.msrb.mxu3 %v77_v6 }
  0x1d   :  { %356 = vmatpush.msra.mxu1 %v76_v7  ;;  %424 = vmatpush.msrb.mxu2 %v76_v7 }
  0x1e   :  { %492 = vmatpush.msrb.mxu3 %v76_v7 }
  0x1f   :  { %357 = vmatpush.msra.mxu1 %v75_v8  ;;  %425 = vmatpush.msrb.mxu2 %v75_v8 }
  0x20   :  { %493 = vmatpush.msrb.mxu3 %v75_v8 }
  0x21   :  { %626 = vmatpush.msrb.mxu1 %v78_v5 }
  0x23   :  { %627 = vmatpush.msrb.mxu1 %v77_v6 }
  0x25   :  { %628 = vmatpush.msrb.mxu1 %v76_v7 }
  0x27   :  { %629 = vmatpush.msrb.mxu1 %v75_v8 }
  0x8d   :  { %v118_v11 = vpop.f32.mrf.mxu0  ;;  %v121_v12 = vpop.f32.mrf.mxu1 }
  0x8e   :  { %v119_v13 = vadd.f32 %v1411_v10, %v118_v11  ;;  %v122_v14 = vadd.f32 %v1411_v10, %v121_v12 }
  0x90   :  { %124 = vst [vmem:[#allocation3] sm:$0xff] %v119_v13 }
  0x91   :  { %125 = vst [vmem:[#allocation3 + $0x8] sm:$0xff] %v122_v14 }
  0x95   :  { %v151_v15 = vpop.f32.mrf.mxu1 }
  0x97   :  { %v129_v16 = vld [vmem:[#allocation3] sm:$0x3]  ;;  %v203_v43 = vld [vmem:[#allocation3 + $0x2] sm:$0x3]  ;;  %v271_v5 = vld [vmem:[#allocation3 + $0x4] sm:$0x3] }
  0x98   :  { %v154_v17 = vadd.f32 %v151_v15, %v129_v16 }
  0x9a   :  { %1414 = vtanh.f32 %v154_v17  ;;  %v1365_v20 = vmul.f32 -1.442695, %v154_v17 }
  0x9c   :  { %1416 = vpow2.f32 %v1365_v20 }
  0xa0   :  { %v1415_v18 = vpop.eup %1414 }
  0xa1   :  { %181 = vrot.lane.b32.xlu0 %v1415_v18, %s1607_s12 }
  0xa2   :  { %v1417_v21 = vpop.eup %1416 }
  0xa3   :  { %v158_v22 = vadd.f32 1.0, %v1417_v21 }
  0xa5   :  { %1418 = vrcp.f32 %v158_v22  ;;  %v170_v28 = vand.u32 2147483648, %v158_v22  ;;  %vm164_vm5 = vweird.f32 %v158_v22  ;;  %v168_v29 = vand.u32 2147483647, %v158_v22 }
  0xa7   :  { %v171_v31 = vor.u32 1.1754944e-38, %v170_v28  ;;  %vm169_vm7 = vcmp.eq.f32.partialorder %v168_v29, 8.507059e+37 }
  0xa9   :  { %176 = vrot.lane.b32.xlu0 %v128_v19, %s1608_s13 }
  0xab   :  { %v1419_v23 = vpop.eup %1418 }
  0xac   :  { %v160_v24 = vmul.f32 %v1419_v23, %v158_v22  ;;  %vm165_vm4 = vweird.f32 %v1419_v23 }
  0xad   :  { %vm166_vm6 = vmor %vm164_vm5, %vm165_vm4 }
  0xae   :  { %v161_v25 = vsub.f32 1.0, %v160_v24 }
  0xb0   :  { %v162_v26 = vmul.f32 %v1419_v23, %v161_v25 }
  0xb2   :  { %v163_v27 = vadd.f32 %v1419_v23, %v162_v26 }
  0xb4   :  { %v167_v30 = vsel %vm166_vm6, %v1419_v23, %v163_v27 }
  0xb5   :  { %v172_v33 = vsel %vm169_vm7, %v171_v31, %v167_v30  ;;  %v339_v31 = vld [vmem:[#allocation3 + $0x6] sm:$0x3] }
 0x113   :  { %v182_v32 = vpop.permute.xlu0 %181 }
 0x114   :  { %v184_v34 = vmul.f32 %v182_v32, %v172_v33 }
 0x116   :  { %186 = vrot.lane.b32.xlu1 %v184_v34, %s1608_s13 }
 0x11b   :  { %v177_v35 = vpop.permute.xlu0 %176 }
 0x11c   :  { %v179_v36 = vmul.f32 %v177_v35, %v172_v33 }
 0x188   :  { %v187_v37 = vpop.permute.xlu1 %186 }
 0x189   :  { %v189_v38 = vadd.f32 %v187_v37, %v179_v36 }
 0x18b   :  { %1420 = vtanh.f32 %v189_v38 }
 0x191   :  { %v1421_v39 = vpop.eup %1420 }
 0x192   :  { %192 = vrot.lane.b32.xlu1 %v1421_v39, %s1607_s12 }
 0x204   :  { %v193_v40 = vpop.permute.xlu1 %192 }
 0x205   :  { %v195_v41 = vmul.f32 %v193_v40, %v172_v33 }
 0x207   :  { %197 = vrot.lane.b32.xlu2 %v195_v41, %s1608_s13 }
 0x261   :  { %v198_v42 = vpop.permute.xlu2 %197 }
 0x262   :  { %201 = vst.msk [vmem:[#allocation4] sm:$0x3] %vm70_vm0, %v198_v42  ;;  %1366 = vmatmul.msk.f32.vlgmr.msra.gmra.mxu2 %vm130_vm3, %v198_v42 }
 0x2e5   :  { %v223_v44 = vpop.f32.mrf.mxu2 }
 0x2e6   :  { %v226_v45 = vadd.f32 %v223_v44, %v203_v43 }
 0x2e8   :  { %1422 = vtanh.f32 %v226_v45  ;;  %v1367_v47 = vmul.f32 -1.442695, %v226_v45 }
 0x2ea   :  { %1424 = vpow2.f32 %v1367_v47 }
 0x2ee   :  { %v1423_v46 = vpop.eup %1422 }
 0x2ef   :  { %249 = vrot.lane.b32.xlu2 %v1423_v46, %s1607_s12 }
 0x2f0   :  { %v1425_v48 = vpop.eup %1424 }
 0x2f1   :  { %v230_v49 = vadd.f32 1.0, %v1425_v48 }
 0x2f3   :  { %1426 = vrcp.f32 %v230_v49  ;;  %v242_v55 = vand.u32 2147483648, %v230_v49  ;;  %vm236_vm9 = vweird.f32 %v230_v49  ;;  %v240_v56 = vand.u32 2147483647, %v230_v49 }
 0x2f5   :  { %v243_v58 = vor.u32 1.1754944e-38, %v242_v55  ;;  %vm241_vm11 = vcmp.eq.f32.partialorder %v240_v56, 8.507059e+37  ;;  %v683_v56 = vld [vmem:[#allocation7 + $0x18] sm:$0xff] }
 0x2f6   :  { %706 = vmatpush.msra.mxu2 %v683_v56 }
 0x2f9   :  { %v1427_v50 = vpop.eup %1426 }
 0x2fa   :  { %v232_v51 = vmul.f32 %v1427_v50, %v230_v49  ;;  %vm237_vm8 = vweird.f32 %v1427_v50 }
 0x2fb   :  { %vm238_vm10 = vmor %vm236_vm9, %vm237_vm8 }
 0x2fc   :  { %v233_v52 = vsub.f32 1.0, %v232_v51 }
 0x2fe   :  { %v234_v53 = vmul.f32 %v1427_v50, %v233_v52 }
 0x300   :  { %v235_v54 = vadd.f32 %v1427_v50, %v234_v53 }
 0x302   :  { %v239_v57 = vsel %vm238_vm10, %v1427_v50, %v235_v54 }
 0x303   :  { %v244_v60 = vsel %vm241_vm11, %v243_v58, %v239_v57  ;;  %v682_v57 = vld [vmem:[#allocation7 + $0x10] sm:$0xff]  ;;  %v681_v58 = vld [vmem:[#allocation7 + $0x8] sm:$0xff] }
 0x304   :  { %v247_v62 = vmul.f32 %v244_v60, %v189_v38  ;;  %707 = vmatpush.msra.mxu2 %v682_v57 }
 0x306   :  { %708 = vmatpush.msra.mxu2 %v681_v58 }
 0x349   :  { %v250_v59 = vpop.permute.xlu2 %249 }
 0x34a   :  { %v252_v61 = vmul.f32 %v250_v59, %v244_v60  ;;  %v680_v59 = vld [vmem:[#allocation7] sm:$0xff] }
 0x34b   :  { %709 = vmatpush.msra.mxu2 %v680_v59 }
 0x34c   :  { %254 = vrot.lane.b32.xlu0 %v252_v61, %s1608_s13 }
 0x3be   :  { %v255_v63 = vpop.permute.xlu0 %254 }
 0x3bf   :  { %v257_v0 = vadd.f32 %v255_v63, %v247_v62  ;;  %v407_v62 = vld [vmem:[#allocation3 + $0x8] sm:$0x3] }
 0x3c1   :  { %1428 = vtanh.f32 %v257_v0 }
 0x3c7   :  { %v1429_v1 = vpop.eup %1428 }
 0x3c8   :  { %260 = vrot.lane.b32.xlu1 %v1429_v1, %s1607_s12  ;;  %v1727_v1 = vld [vmem:[%s1908_s6] ss:$0 sm:$0xff] }
 0x43a   :  { %v261_v2 = vpop.permute.xlu1 %260 }
 0x43b   :  { %v263_v3 = vmul.f32 %v261_v2, %v244_v60 }
 0x43d   :  { %265 = vrot.lane.b32.xlu2 %v263_v3, %s1608_s13 }
 0x497   :  { %v266_v4 = vpop.permute.xlu2 %265 }
 0x498   :  { %269 = vst.msk [vmem:[#allocation4 + $0x2] sm:$0x3] %vm70_vm0, %v266_v4  ;;  %1368 = vmatmul.msk.f32.vlgmr.msra.gmra.mxu3 %vm130_vm3, %v266_v4 }
 0x51b   :  { %v291_v6 = vpop.f32.mrf.mxu3 }
 0x51c   :  { %v294_v7 = vadd.f32 %v291_v6, %v271_v5 }
 0x51e   :  { %1430 = vtanh.f32 %v294_v7  ;;  %v1369_v9 = vmul.f32 -1.442695, %v294_v7 }
 0x520   :  { %1432 = vpow2.f32 %v1369_v9 }
 0x524   :  { %v1431_v8 = vpop.eup %1430 }
 0x525   :  { %317 = vrot.lane.b32.xlu0 %v1431_v8, %s1607_s12 }
 0x526   :  { %v1433_v10 = vpop.eup %1432 }
 0x527   :  { %v298_v11 = vadd.f32 1.0, %v1433_v10 }
 0x529   :  { %1434 = vrcp.f32 %v298_v11  ;;  %v310_v17 = vand.u32 2147483648, %v298_v11  ;;  %vm304_vm13 = vweird.f32 %v298_v11  ;;  %v308_v18 = vand.u32 2147483647, %v298_v11 }
 0x52b   :  { %v311_v20 = vor.u32 1.1754944e-38, %v310_v17  ;;  %vm309_vm15 = vcmp.eq.f32.partialorder %v308_v18, 8.507059e+37 }
 0x52f   :  { %v1435_v12 = vpop.eup %1434 }
 0x530   :  { %v300_v13 = vmul.f32 %v1435_v12, %v298_v11  ;;  %vm305_vm12 = vweird.f32 %v1435_v12 }
 0x531   :  { %vm306_vm14 = vmor %vm304_vm13, %vm305_vm12 }
 0x532   :  { %v301_v14 = vsub.f32 1.0, %v300_v13 }
 0x534   :  { %v302_v15 = vmul.f32 %v1435_v12, %v301_v14 }
 0x536   :  { %v303_v16 = vadd.f32 %v1435_v12, %v302_v15 }
 0x538   :  { %v307_v19 = vsel %vm306_vm14, %v1435_v12, %v303_v16 }
 0x539   :  { %v312_v22 = vsel %vm309_vm15, %v311_v20, %v307_v19 }
 0x53a   :  { %v315_v24 = vmul.f32 %v312_v22, %v257_v0 }
 0x597   :  { %v318_v21 = vpop.permute.xlu0 %317 }
 0x598   :  { %v320_v23 = vmul.f32 %v318_v21, %v312_v22 }
 0x59a   :  { %322 = vrot.lane.b32.xlu1 %v320_v23, %s1608_s13 }
 0x60c   :  { %v323_v25 = vpop.permute.xlu1 %322 }
 0x60d   :  { %v325_v26 = vadd.f32 %v323_v25, %v315_v24 }
 0x60f   :  { %1436 = vtanh.f32 %v325_v26 }
 0x615   :  { %v1437_v27 = vpop.eup %1436 }
 0x616   :  { %328 = vrot.lane.b32.xlu2 %v1437_v27, %s1607_s12  ;;  %v1739_v27 = vld [vmem:[#allocation9 + $0x10] sm:$0xff] }
 0x670   :  { %v329_v28 = vpop.permute.xlu2 %328 }
 0x671   :  { %v331_v29 = vmul.f32 %v329_v28, %v312_v22  ;;  %v1743_v28 = vld [vmem:[#allocation9 + $0x8] sm:$0xff] }
 0x673   :  { %333 = vrot.lane.b32.xlu0 %v331_v29, %s1608_s13  ;;  %v1749_v29 = vld [vmem:[#allocation9] sm:$0xff] }
 0x6e5   :  { %v334_v30 = vpop.permute.xlu0 %333 }
 0x6e6   :  { %337 = vst.msk [vmem:[#allocation4 + $0x4] sm:$0x3] %vm70_vm0, %v334_v30  ;;  %1370 = vmatmul.msk.f32.vlgmr.msra.gmra.mxu1 %vm130_vm3, %v334_v30 }
 0x763   :  { %v359_v32 = vpop.f32.mrf.mxu1 }
 0x764   :  { %v362_v33 = vadd.f32 %v359_v32, %v339_v31  ;;  %v720_v31 = vld [vmem:[#allocation2 + $0x4] sm:$0x3]  ;;  %v475_v32 = vld [vmem:[#allocation3 + $0xa] sm:$0x3] }
 0x766   :  { %1438 = vtanh.f32 %v362_v33  ;;  %v1371_v35 = vmul.f32 -1.442695, %v362_v33 }
 0x768   :  { %1440 = vpow2.f32 %v1371_v35 }
 0x76c   :  { %v1439_v34 = vpop.eup %1438 }
 0x76d   :  { %385 = vrot.lane.b32.xlu1 %v1439_v34, %s1607_s12 }
 0x76e   :  { %v1441_v36 = vpop.eup %1440 }
 0x76f   :  { %v366_v37 = vadd.f32 1.0, %v1441_v36 }
 0x771   :  { %1442 = vrcp.f32 %v366_v37  ;;  %v378_v43 = vand.u32 2147483648, %v366_v37  ;;  %vm372_vm2 = vweird.f32 %v366_v37  ;;  %v376_v44 = vand.u32 2147483647, %v366_v37 }
 0x773   :  { %v379_v46 = vor.u32 1.1754944e-38, %v378_v43  ;;  %vm377_vm5 = vcmp.eq.f32.partialorder %v376_v44, 8.507059e+37 }
 0x777   :  { %v1443_v38 = vpop.eup %1442 }
 0x778   :  { %v368_v39 = vmul.f32 %v1443_v38, %v366_v37  ;;  %vm373_vm1 = vweird.f32 %v1443_v38 }
 0x779   :  { %vm374_vm4 = vmor %vm372_vm2, %vm373_vm1 }
 0x77a   :  { %v369_v40 = vsub.f32 1.0, %v368_v39  ;;  %v722_v39 = vld [vmem:[#allocation2 + $0x6] sm:$0x3] }
 0x77c   :  { %v370_v41 = vmul.f32 %v1443_v38, %v369_v40 }
 0x77e   :  { %v371_v42 = vadd.f32 %v1443_v38, %v370_v41 }
 0x780   :  { %v375_v45 = vsel %vm374_vm4, %v1443_v38, %v371_v42 }
 0x781   :  { %v380_v48 = vsel %vm377_vm5, %v379_v46, %v375_v45 }
 0x782   :  { %v383_v50 = vmul.f32 %v380_v48, %v325_v26  ;;  %v1737_v26 = vld [vmem:[#allocation9 + $0x18] sm:$0xff] }
 0x783   :  { %739 = vmatpush.msra.mxu3 %v1737_v26  ;;  %809 = vmatpush.msra.mxu0 %v1737_v26 }
 0x784   :  { %876 = vmatpush.msra.mxu1 %v1737_v26 }
 0x785   :  { %740 = vmatpush.msra.mxu3 %v1739_v27  ;;  %810 = vmatpush.msra.mxu0 %v1739_v27 }
 0x786   :  { %877 = vmatpush.msra.mxu1 %v1739_v27 }
 0x787   :  { %741 = vmatpush.msra.mxu3 %v1743_v28  ;;  %811 = vmatpush.msra.mxu0 %v1743_v28 }
 0x788   :  { %878 = vmatpush.msra.mxu1 %v1743_v28 }
 0x789   :  { %742 = vmatpush.msra.mxu3 %v1749_v29  ;;  %812 = vmatpush.msra.mxu0 %v1749_v29 }
 0x78a   :  { %879 = vmatpush.msra.mxu1 %v1749_v29 }
 0x7df   :  { %v386_v47 = vpop.permute.xlu1 %385 }
 0x7e0   :  { %v388_v49 = vmul.f32 %v386_v47, %v380_v48 }
 0x7e2   :  { %390 = vrot.lane.b32.xlu2 %v388_v49, %s1608_s13 }
 0x83c   :  { %v391_v51 = vpop.permute.xlu2 %390 }
 0x83d   :  { %v393_v52 = vadd.f32 %v391_v51, %v383_v50 }
 0x83f   :  { %1444 = vtanh.f32 %v393_v52 }
 0x845   :  { %v1445_v53 = vpop.eup %1444 }
 0x846   :  { %396 = vrot.lane.b32.xlu0 %v1445_v53, %s1607_s12 }
 0x8b8   :  { %v397_v54 = vpop.permute.xlu0 %396 }
 0x8b9   :  { %v399_v55 = vmul.f32 %v397_v54, %v380_v48 }
 0x8bb   :  { %401 = vrot.lane.b32.xlu1 %v399_v55, %s1608_s13 }
 0x92d   :  { %v402_v60 = vpop.permute.xlu1 %401 }
 0x92e   :  { %405 = vst.msk [vmem:[#allocation4 + $0x6] sm:$0x3] %vm70_vm0, %v402_v60  ;;  %1372 = vmatmul.msk.f32.vlgmr.msrb.gmra.mxu2 %vm130_vm3, %v402_v60 }
 0x92f   :  { %1144 = vmatpush.msrb.mxu2 %v1737_v26 }
 0x931   :  { %1145 = vmatpush.msrb.mxu2 %v1739_v27 }
 0x933   :  { %1146 = vmatpush.msrb.mxu2 %v1743_v28 }
 0x935   :  { %v678_v61 = vld [vmem:[#allocation4] sm:$0xff]  ;;  %1147 = vmatpush.msrb.mxu2 %v1749_v29 }
 0x936   :  { %1380 = vmatmul.msk.f32.vlgmr.msra.gmra.mxu2 %vm130_vm3, %v678_v61 }
 0x9b1   :  { %v427_v63 = vpop.f32.mrf.mxu2 }
 0x9b2   :  { %v430_v0 = vadd.f32 %v427_v63, %v407_v62 }
 0x9b4   :  { %1446 = vtanh.f32 %v430_v0  ;;  %v1373_v5 = vmul.f32 -1.442695, %v430_v0 }
 0x9b6   :  { %1448 = vpow2.f32 %v1373_v5 }
 0x9b9   :  { %v711_v2 = vpop.f32.mrf.mxu2 }
 0x9ba   :  { %v1447_v3 = vpop.eup %1446  ;;  %v712_v4 = vadd.f32 %v1727_v1, %v711_v2 }
 0x9bb   :  { %453 = vrot.lane.b32.xlu2 %v1447_v3, %s1607_s12 }
 0x9bc   :  { %717 = vst [vmem:[#allocation3] sm:$0xff] %v712_v4  ;;  %v1449_v6 = vpop.eup %1448 }
 0x9bd   :  { %v434_v7 = vadd.f32 1.0, %v1449_v6 }
 0x9bf   :  { %1450 = vrcp.f32 %v434_v7  ;;  %v446_v13 = vand.u32 2147483648, %v434_v7  ;;  %vm440_vm7 = vweird.f32 %v434_v7  ;;  %v444_v14 = vand.u32 2147483647, %v434_v7 }
 0x9c1   :  { %v447_v16 = vor.u32 1.1754944e-38, %v446_v13  ;;  %vm445_vm9 = vcmp.eq.f32.partialorder %v444_v14, 8.507059e+37 }
 0x9c3   :  { %v723_v35 = vld [vmem:[#allocation3] sm:$0x3] }
 0x9c5   :  { %v1451_v8 = vpop.eup %1450 }
 0x9c6   :  { %v436_v9 = vmul.f32 %v1451_v8, %v434_v7  ;;  %vm441_vm6 = vweird.f32 %v1451_v8 }
 0x9c7   :  { %vm442_vm8 = vmor %vm440_vm7, %vm441_vm6 }
 0x9c8   :  { %v437_v10 = vsub.f32 1.0, %v436_v9 }
 0x9ca   :  { %v438_v11 = vmul.f32 %v1451_v8, %v437_v10 }
 0x9cc   :  { %v439_v12 = vadd.f32 %v1451_v8, %v438_v11 }
 0x9ce   :  { %v443_v15 = vsel %vm442_vm8, %v1451_v8, %v439_v12 }
 0x9cf   :  { %v448_v18 = vsel %vm445_vm9, %v447_v16, %v443_v15 }
 0x9d0   :  { %v451_v20 = vmul.f32 %v448_v18, %v393_v52 }
 0xa15   :  { %v454_v17 = vpop.permute.xlu2 %453 }
 0xa16   :  { %v456_v19 = vmul.f32 %v454_v17, %v448_v18 }
 0xa18   :  { %458 = vrot.lane.b32.xlu0 %v456_v19, %s1608_s13 }
 0xa8a   :  { %v459_v21 = vpop.permute.xlu0 %458 }
 0xa8b   :  { %v1732_v22 = vadd.f32 %v459_v21, %v451_v20 }
 0xa8d   :  { %1452 = vtanh.f32 %v1732_v22 }
 0xa93   :  { %v1453_v23 = vpop.eup %1452 }
 0xa94   :  { %464 = vrot.lane.b32.xlu1 %v1453_v23, %s1607_s12  ;;  %v543_v23 = vld [vmem:[#allocation3 + $0xc] sm:$0x3] }
 0xb06   :  { %v465_v24 = vpop.permute.xlu1 %464 }
 0xb07   :  { %v467_v25 = vmul.f32 %v465_v24, %v448_v18 }
 0xb09   :  { %469 = vrot.lane.b32.xlu2 %v467_v25, %s1608_s13 }
 0xb63   :  { %v470_v30 = vpop.permute.xlu2 %469 }
 0xb64   :  { %473 = vst.msk [vmem:[#allocation4 + $0x8] sm:$0x3] %vm70_vm0, %v470_v30  ;;  %1374 = vmatmul.msk.f32.vlgmr.msrb.gmra.mxu3 %vm130_vm3, %v470_v30 }
 0xb65   :  { %943 = vmatpush.msrb.mxu3 %v1737_v26 }
 0xb67   :  { %944 = vmatpush.msrb.mxu3 %v1739_v27 }
 0xb69   :  { %945 = vmatpush.msrb.mxu3 %v1743_v28 }
 0xb6b   :  { %946 = vmatpush.msrb.mxu3 %v1749_v29 }
 0xb6c   :  { %1382 = vmatmul.msk.f32.vlgmr.msra.gmra.mxu3 %vm130_vm3, %v720_v31  ;;  %v794_v31 = vld [vmem:[#allocation3 + $0x2] sm:$0x3] }
 0xb6d   :  { %1211 = vmatpush.msra.mxu3 %v1737_v26 }
 0xb6f   :  { %1212 = vmatpush.msra.mxu3 %v1739_v27 }
 0xb71   :  { %1213 = vmatpush.msra.mxu3 %v1743_v28 }
 0xb73   :  { %1214 = vmatpush.msra.mxu3 %v1749_v29 }
 0xbe7   :  { %v495_v33 = vpop.f32.mrf.mxu3 }
 0xbe8   :  { %v498_v34 = vadd.f32 %v495_v33, %v475_v32 }
 0xbea   :  { %1454 = vtanh.f32 %v498_v34  ;;  %v1375_v41 = vmul.f32 -1.442695, %v498_v34 }
 0xbef   :  { %v744_v36 = vpop.f32.mrf.mxu3 }
 0xbf0   :  { %v1455_v37 = vpop.eup %1454  ;;  %v747_v38 = vadd.f32 %v744_v36, %v723_v35 }
 0xbf1   :  { %521 = vrot.lane.b32.xlu0 %v1455_v37, %s1607_s12 }
 0xbf2   :  { %1456 = vtanh.f32 %v747_v38  ;;  %v1383_v42 = vmul.f32 -1.442695, %v747_v38 }
 0xbf3   :  { %1458 = vpow2.f32 %v1375_v41 }
 0xbf4   :  { %1460 = vpow2.f32 %v1383_v42 }
 0xbf8   :  { %v1457_v40 = vpop.eup %1456 }
 0xbf9   :  { %769 = vrot.lane.b32.xlu0 %v722_v39, %s1608_s13  ;;  %774 = vrot.lane.b32.xlu1 %v1457_v40, %s1607_s12  ;;  %v1459_v43 = vpop.eup %1458 }
 0xbfa   :  { %v502_v44 = vadd.f32 1.0, %v1459_v43  ;;  %v1461_v45 = vpop.eup %1460 }
 0xbfb   :  { %v751_v46 = vadd.f32 1.0, %v1461_v45 }
 0xbfc   :  { %1462 = vrcp.f32 %v502_v44  ;;  %v514_v55 = vand.u32 2147483648, %v502_v44  ;;  %vm508_vm11 = vweird.f32 %v502_v44  ;;  %v512_v56 = vand.u32 2147483647, %v502_v44 }
 0xbfd   :  { %1464 = vrcp.f32 %v751_v46  ;;  %v763_v0 = vand.u32 2147483648, %v751_v46  ;;  %vm757_vm15 = vweird.f32 %v751_v46  ;;  %v761_v2 = vand.u32 2147483647, %v751_v46 }
 0xbfe   :  { %v515_v59 = vor.u32 1.1754944e-38, %v514_v55  ;;  %vm513_vm13 = vcmp.eq.f32.partialorder %v512_v56, 8.507059e+37 }
 0xbff   :  { %v764_v4 = vor.u32 1.1754944e-38, %v763_v0  ;;  %vm762_vm2 = vcmp.eq.f32.partialorder %v761_v2, 8.507059e+37 }
 0xc02   :  { %v1463_v47 = vpop.eup %1462 }
 0xc03   :  { %v504_v48 = vmul.f32 %v1463_v47, %v502_v44  ;;  %v1465_v50 = vpop.eup %1464  ;;  %vm509_vm10 = vweird.f32 %v1463_v47 }
 0xc04   :  { %v753_v52 = vmul.f32 %v1465_v50, %v751_v46  ;;  %vm510_vm12 = vmor %vm508_vm11, %vm509_vm10  ;;  %vm758_vm14 = vweird.f32 %v1465_v50 }
 0xc05   :  { %v505_v49 = vsub.f32 1.0, %v504_v48  ;;  %vm759_vm1 = vmor %vm757_vm15, %vm758_vm14 }
 0xc06   :  { %v754_v54 = vsub.f32 1.0, %v753_v52 }
 0xc07   :  { %v506_v51 = vmul.f32 %v1463_v47, %v505_v49 }
 0xc08   :  { %v755_v58 = vmul.f32 %v1465_v50, %v754_v54 }
 0xc09   :  { %v507_v53 = vadd.f32 %v1463_v47, %v506_v51 }
 0xc0a   :  { %v756_v63 = vadd.f32 %v1465_v50, %v755_v58 }
 0xc0b   :  { %v511_v57 = vsel %vm510_vm12, %v1463_v47, %v507_v53 }
 0xc0c   :  { %v516_v61 = vsel %vm513_vm13, %v515_v59, %v511_v57  ;;  %v760_v3 = vsel %vm759_vm1, %v1465_v50, %v756_v63 }
 0xc0d   :  { %v765_v5 = vsel %vm762_vm2, %v764_v4, %v760_v3  ;;  %v519_v8 = vmul.f32 %v516_v61, %v1732_v22 }
 0xc63   :  { %v522_v60 = vpop.permute.xlu0 %521 }
 0xc64   :  { %v524_v62 = vmul.f32 %v522_v60, %v516_v61 }
 0xc66   :  { %526 = vrot.lane.b32.xlu2 %v524_v62, %s1608_s13 }
 0xc6b   :  { %v775_v6 = vpop.permute.xlu1 %774  ;;  %v770_v12 = vpop.permute.xlu0 %769 }
 0xc6c   :  { %v777_v7 = vmul.f32 %v775_v6, %v765_v5  ;;  %v772_v13 = vmul.f32 %v770_v12, %v765_v5 }
 0xc6e   :  { %779 = vrot.lane.b32.xlu1 %v777_v7, %s1608_s13 }
 0xcc0   :  { %v527_v9 = vpop.permute.xlu2 %526 }
 0xcc1   :  { %v1778_v10 = vadd.f32 %v527_v9, %v519_v8 }
 0xcc3   :  { %1466 = vtanh.f32 %v1778_v10 }
 0xcc9   :  { %v1467_v11 = vpop.eup %1466 }
 0xcca   :  { %532 = vrot.lane.b32.xlu2 %v1467_v11, %s1607_s12 }
 0xce0   :  { %v780_v14 = vpop.permute.xlu1 %779 }
 0xce1   :  { %v1782_v15 = vadd.f32 %v780_v14, %v772_v13 }
 0xce3   :  { %1468 = vtanh.f32 %v1782_v15 }
 0xce9   :  { %v1469_v16 = vpop.eup %1468 }
 0xcea   :  { %785 = vrot.lane.b32.xlu0 %v1469_v16, %s1607_s12 }
 0xd24   :  { %v533_v17 = vpop.permute.xlu2 %532 }
 0xd25   :  { %v535_v18 = vmul.f32 %v533_v17, %v516_v61  ;;  %v861_v17 = vld [vmem:[#allocation3 + $0x4] sm:$0x3] }
 0xd27   :  { %537 = vrot.lane.b32.xlu1 %v535_v18, %s1608_s13 }
 0xd5c   :  { %v786_v19 = vpop.permute.xlu0 %785 }
 0xd5d   :  { %v788_v20 = vmul.f32 %v786_v19, %v765_v5 }
 0xd5f   :  { %790 = vrot.lane.b32.xlu2 %v788_v20, %s1608_s13 }
 0xd99   :  { %v538_v21 = vpop.permute.xlu1 %537 }
 0xd9a   :  { %541 = vst.msk [vmem:[#allocation4 + $0xa] sm:$0x3] %vm70_vm0, %v538_v21  ;;  %1376 = vmatmul.msk.f32.vlgmr.msrb.gmra.mxu0 %vm130_vm3, %v538_v21 }
 0xd9b   :  { %1010 = vmatpush.msrb.mxu0 %v1737_v26 }
 0xd9d   :  { %1011 = vmatpush.msrb.mxu0 %v1739_v27 }
 0xd9f   :  { %1012 = vmatpush.msrb.mxu0 %v1743_v28 }
 0xda1   :  { %1013 = vmatpush.msrb.mxu0 %v1749_v29 }
 0xdb9   :  { %v791_v22 = vpop.permute.xlu2 %790 }
 0xdba   :  { %793 = vst.msk [vmem:[#allocation5] sm:$0x3] %vm70_vm0, %v791_v22  ;;  %1384 = vmatmul.msk.f32.vlgmr.msra.gmra.mxu0 %vm130_vm3, %v791_v22 }
 0xe17   :  { %v563_v24 = vpop.f32.mrf.mxu0 }
 0xe18   :  { %v566_v25 = vadd.f32 %v563_v24, %v543_v23 }
 0xe1a   :  { %1470 = vtanh.f32 %v566_v25  ;;  %v1377_v35 = vmul.f32 -1.442695, %v566_v25 }
 0xe20   :  { %v1471_v30 = vpop.eup %1470 }
 0xe21   :  { %589 = vrot.lane.b32.xlu0 %v1471_v30, %s1607_s12 }
 0xe37   :  { %v814_v32 = vpop.f32.mrf.mxu0 }
 0xe38   :  { %v817_v33 = vadd.f32 %v814_v32, %v794_v31 }
 0xe3a   :  { %1472 = vtanh.f32 %v817_v33  ;;  %v1385_v41 = vmul.f32 -1.442695, %v817_v33  ;;  %v611_v33 = vld [vmem:[#allocation3 + $0xe] sm:$0x3] }
 0xe3b   :  { %1474 = vpow2.f32 %v1377_v35 }
 0xe40   :  { %v1473_v34 = vpop.eup %1472 }
 0xe41   :  { %840 = vrot.lane.b32.xlu1 %v1473_v34, %s1607_s12  ;;  %v1475_v36 = vpop.eup %1474 }
 0xe42   :  { %v570_v37 = vadd.f32 1.0, %v1475_v36 }
 0xe44   :  { %1476 = vrcp.f32 %v570_v37  ;;  %v582_v44 = vand.u32 2147483648, %v570_v37  ;;  %vm576_vm5 = vweird.f32 %v570_v37  ;;  %v580_v45 = vand.u32 2147483647, %v570_v37 }
 0xe45   :  { %1478 = vpow2.f32 %v1385_v41 }
 0xe46   :  { %v583_v48 = vor.u32 1.1754944e-38, %v582_v44  ;;  %vm581_vm7 = vcmp.eq.f32.partialorder %v580_v45, 8.507059e+37 }
 0xe4a   :  { %v1477_v38 = vpop.eup %1476 }
 0xe4b   :  { %v572_v39 = vmul.f32 %v1477_v38, %v570_v37  ;;  %vm577_vm4 = vweird.f32 %v1477_v38  ;;  %v1479_v46 = vpop.eup %1478 }
 0xe4c   :  { %vm578_vm6 = vmor %vm576_vm5, %vm577_vm4  ;;  %v821_v49 = vadd.f32 1.0, %v1479_v46 }
 0xe4d   :  { %v573_v40 = vsub.f32 1.0, %v572_v39 }
 0xe4e   :  { %1480 = vrcp.f32 %v821_v49  ;;  %v833_v58 = vand.u32 2147483648, %v821_v49  ;;  %vm827_vm9 = vweird.f32 %v821_v49  ;;  %v831_v59 = vand.u32 2147483647, %v821_v49 }
 0xe4f   :  { %v574_v42 = vmul.f32 %v1477_v38, %v573_v40 }
 0xe50   :  { %v834_v61 = vor.u32 1.1754944e-38, %v833_v58  ;;  %vm832_vm11 = vcmp.eq.f32.partialorder %v831_v59, 8.507059e+37 }
 0xe51   :  { %v575_v43 = vadd.f32 %v1477_v38, %v574_v42 }
 0xe53   :  { %v579_v47 = vsel %vm578_vm6, %v1477_v38, %v575_v43 }
 0xe54   :  { %v584_v50 = vsel %vm581_vm7, %v583_v48, %v579_v47  ;;  %v1481_v53 = vpop.eup %1480 }
 0xe55   :  { %v823_v54 = vmul.f32 %v1481_v53, %v821_v49  ;;  %vm828_vm8 = vweird.f32 %v1481_v53  ;;  %v587_v2 = vmul.f32 %v584_v50, %v1778_v10 }
 0xe56   :  { %vm829_vm10 = vmor %vm827_vm9, %vm828_vm8 }
 0xe57   :  { %v824_v55 = vsub.f32 1.0, %v823_v54 }
 0xe59   :  { %v825_v56 = vmul.f32 %v1481_v53, %v824_v55 }
 0xe5b   :  { %v826_v57 = vadd.f32 %v1481_v53, %v825_v56 }
 0xe5d   :  { %v830_v60 = vsel %vm829_vm10, %v1481_v53, %v826_v57 }
 0xe5e   :  { %v835_v63 = vsel %vm832_vm11, %v834_v61, %v830_v60  ;;  %v928_v61 = vld [vmem:[#allocation3 + $0x6] sm:$0x3] }
 0xe5f   :  { %v838_v6 = vmul.f32 %v835_v63, %v1782_v15 }
 0xe93   :  { %v590_v51 = vpop.permute.xlu0 %589 }
 0xe94   :  { %v592_v52 = vmul.f32 %v590_v51, %v584_v50 }
 0xe96   :  { %594 = vrot.lane.b32.xlu2 %v592_v52, %s1608_s13 }
 0xeb3   :  { %v841_v62 = vpop.permute.xlu1 %840 }
 0xeb4   :  { %v843_v0 = vmul.f32 %v841_v62, %v835_v63 }
 0xeb6   :  { %845 = vrot.lane.b32.xlu0 %v843_v0, %s1608_s13 }
 0xef0   :  { %v595_v3 = vpop.permute.xlu2 %594 }
 0xef1   :  { %v1801_v4 = vadd.f32 %v595_v3, %v587_v2 }
 0xef3   :  { %1482 = vtanh.f32 %v1801_v4 }
 0xef9   :  { %v1483_v5 = vpop.eup %1482 }
 0xefa   :  { %600 = vrot.lane.b32.xlu1 %v1483_v5, %s1607_s12 }
 0xf28   :  { %v846_v7 = vpop.permute.xlu0 %845 }
 0xf29   :  { %v848_v8 = vadd.f32 %v846_v7, %v838_v6 }
 0xf2b   :  { %1484 = vtanh.f32 %v848_v8 }
 0xf31   :  { %v1485_v9 = vpop.eup %1484 }
 0xf32   :  { %851 = vrot.lane.b32.xlu2 %v1485_v9, %s1607_s12 }
 0xf6c   :  { %v601_v11 = vpop.permute.xlu1 %600 }
 0xf6d   :  { %v603_v12 = vmul.f32 %v601_v11, %v584_v50 }
 0xf6f   :  { %605 = vrot.lane.b32.xlu0 %v603_v12, %s1608_s13 }
 0xf8c   :  { %v852_v10 = vpop.permute.xlu2 %851 }
 0xf8d   :  { %v854_v13 = vmul.f32 %v852_v10, %v835_v63 }
 0xf8f   :  { %856 = vrot.lane.b32.xlu1 %v854_v13, %s1608_s13 }
 0xfe1   :  { %v606_v14 = vpop.permute.xlu0 %605 }
 0xfe2   :  { %609 = vst.msk [vmem:[#allocation4 + $0xc] sm:$0x3] %vm70_vm0, %v606_v14  ;;  %1378 = vmatmul.msk.f32.vlgmr.msrb.gmra.mxu1 %vm130_vm3, %v606_v14 }
 0xfe3   :  { %1077 = vmatpush.msrb.mxu1 %v1737_v26 }
 0xfe5   :  { %1078 = vmatpush.msrb.mxu1 %v1739_v27 }
 0xfe7   :  { %1079 = vmatpush.msrb.mxu1 %v1743_v28 }
 0xfe9   :  { %1080 = vmatpush.msrb.mxu1 %v1749_v29 }
0x1001   :  { %v857_v15 = vpop.permute.xlu1 %856 }
0x1002   :  { %860 = vst.msk [vmem:[#allocation5 + $0x2] sm:$0x3] %vm70_vm0, %v857_v15  ;;  %1386 = vmatmul.msk.f32.vlgmr.msra.gmra.mxu1 %vm130_vm3, %v857_v15 }
0x105f   :  { %v631_v16 = vpop.f32.mrf.mxu1 }
0x1060   :  { %v634_v34 = vadd.f32 %v631_v16, %v611_v33  ;;  %v1280_v33 = vld [vmem:[%s1909_s7 + $0x18] sm:$0xff] }
0x1061   :  { %1303 = vmatpush.msra.mxu0 %v1280_v33 }
0x1062   :  { %v1379_v43 = vmul.f32 -1.442695, %v634_v34 }
0x107f   :  { %v881_v18 = vpop.f32.mrf.mxu1 }
0x1080   :  { %v884_v19 = vadd.f32 %v881_v18, %v861_v17 }
0x1082   :  { %1486 = vtanh.f32 %v884_v19  ;;  %v1387_v26 = vmul.f32 -1.442695, %v884_v19 }
0x1084   :  { %1488 = vpow2.f32 %v1387_v26 }
0x1088   :  { %v1487_v20 = vpop.eup %1486 }
0x1089   :  { %907 = vrot.lane.b32.xlu2 %v1487_v20, %s1607_s12 }
0x108a   :  { %v1489_v27 = vpop.eup %1488 }
0x108b   :  { %v888_v21 = vadd.f32 1.0, %v1489_v27 }
0x108d   :  { %1490 = vrcp.f32 %v888_v21  ;;  %v900_v25 = vand.u32 2147483648, %v888_v21  ;;  %vm894_vm13 = vweird.f32 %v888_v21  ;;  %v898_v30 = vand.u32 2147483647, %v888_v21 }
0x108e   :  { %1492 = vtanh.f32 %v634_v34  ;;  %v1279_v34 = vld [vmem:[%s1909_s7 + $0x10] sm:$0xff] }
0x108f   :  { %v901_v32 = vor.u32 1.1754944e-38, %v900_v25  ;;  %vm899_vm15 = vcmp.eq.f32.partialorder %v898_v30, 8.507059e+37  ;;  %1304 = vmatpush.msra.mxu0 %v1279_v34 }
0x1093   :  { %v1491_v28 = vpop.eup %1490 }
0x1094   :  { %v890_v29 = vmul.f32 %v1491_v28, %v888_v21  ;;  %vm895_vm12 = vweird.f32 %v1491_v28  ;;  %v1493_v38 = vpop.eup %1492 }
0x1095   :  { %vm896_vm14 = vmor %vm894_vm13, %vm895_vm12  ;;  %vm1352_vm13 = vcmask 7168  }
0x1096   :  { %v891_v22 = vsub.f32 1.0, %v890_v29 }
0x1098   :  { %v892_v23 = vmul.f32 %v1491_v28, %v891_v22 }
0x109a   :  { %v893_v24 = vadd.f32 %v1491_v28, %v892_v23 }
0x109c   :  { %v897_v31 = vsel %vm896_vm14, %v1491_v28, %v893_v24 }
0x109d   :  { %v902_v36 = vsel %vm899_vm15, %v901_v32, %v897_v31 }
0x109e   :  { %v905_v39 = vmul.f32 %v902_v36, %v848_v8 }
0x10e3   :  { %v908_v35 = vpop.permute.xlu2 %907 }
0x10e4   :  { %v910_v37 = vmul.f32 %v908_v35, %v902_v36  ;;  %v1278_v35 = vld [vmem:[%s1909_s7 + $0x8] sm:$0xff] }
0x10e5   :  { %1305 = vmatpush.msra.mxu0 %v1278_v35 }
0x10e6   :  { %912 = vrot.lane.b32.xlu0 %v910_v37, %s1608_s13 }
0x10ee   :  { %657 = vrot.lane.b32.xlu0 %v1493_v38, %s1607_s12 }
0x1158   :  { %v913_v40 = vpop.permute.xlu0 %912 }
0x1159   :  { %v1820_v41 = vadd.f32 %v913_v40, %v905_v39 }
0x115b   :  { %1494 = vtanh.f32 %v1820_v41 }
0x115c   :  { %1496 = vpow2.f32 %v1379_v43 }
0x1160   :  { %v658_v56 = vpop.permute.xlu0 %657 }
0x1161   :  { %v1495_v42 = vpop.eup %1494 }
0x1162   :  { %918 = vrot.lane.b32.xlu1 %v1495_v42, %s1607_s12  ;;  %v1497_v44 = vpop.eup %1496 }
0x1163   :  { %v638_v45 = vadd.f32 1.0, %v1497_v44 }
0x1165   :  { %1498 = vrcp.f32 %v638_v45  ;;  %v650_v53 = vand.u32 2147483648, %v638_v45  ;;  %vm644_vm2 = vweird.f32 %v638_v45  ;;  %v648_v54 = vand.u32 2147483647, %v638_v45 }
0x1167   :  { %v651_v57 = vor.u32 1.1754944e-38, %v650_v53  ;;  %vm649_vm5 = vcmp.eq.f32.partialorder %v648_v54, 8.507059e+37 }
0x116b   :  { %v1499_v46 = vpop.eup %1498 }
0x116c   :  { %v640_v47 = vmul.f32 %v1499_v46, %v638_v45  ;;  %vm645_vm1 = vweird.f32 %v1499_v46 }
0x116d   :  { %vm646_vm4 = vmor %vm644_vm2, %vm645_vm1 }
0x116e   :  { %v641_v48 = vsub.f32 1.0, %v640_v47 }
0x1170   :  { %v642_v49 = vmul.f32 %v1499_v46, %v641_v48 }
0x1172   :  { %v643_v51 = vadd.f32 %v1499_v46, %v642_v49 }
0x1174   :  { %v647_v55 = vsel %vm646_vm4, %v1499_v46, %v643_v51 }
0x1175   :  { %v652_v58 = vsel %vm649_vm5, %v651_v57, %v647_v55 }
0x1176   :  { %v660_v59 = vmul.f32 %v658_v56, %v652_v58  ;;  %v655_v2 = vmul.f32 %v652_v58, %v1801_v4 }
0x11d4   :  { %v919_v50 = vpop.permute.xlu1 %918 }
0x11d5   :  { %v921_v52 = vmul.f32 %v919_v50, %v902_v36  ;;  %v1277_v36 = vld [vmem:[%s1909_s7] sm:$0xff] }
0x11d6   :  { %1306 = vmatpush.msra.mxu0 %v1277_v36 }
0x11d7   :  { %923 = vrot.lane.b32.xlu2 %v921_v52, %s1608_s13 }
0x11df   :  { %662 = vrot.lane.b32.xlu2 %v660_v59, %s1608_s13 }
0x1231   :  { %v924_v60 = vpop.permute.xlu2 %923 }
0x1232   :  { %927 = vst.msk [vmem:[#allocation5 + $0x4] sm:$0x3] %vm70_vm0, %v924_v60  ;;  %1388 = vmatmul.msk.f32.vlgmr.msrb.gmra.mxu3 %vm130_vm3, %v924_v60 }
0x1239   :  { %v663_v0 = vpop.permute.xlu2 %662 }
0x123a   :  { %v1829_v3 = vadd.f32 %v663_v0, %v655_v2 }
0x12b5   :  { %v948_v62 = vpop.f32.mrf.mxu3 }
0x12b6   :  { %v951_v63 = vadd.f32 %v948_v62, %v928_v61 }
0x12b8   :  { %1500 = vtanh.f32 %v951_v63  ;;  %v1389_v7 = vmul.f32 -1.442695, %v951_v63 }
0x12b9   :  { %1502 = vtanh.f32 %v1829_v3 }
0x12ba   :  { %1504 = vpow2.f32 %v1389_v7 }
0x12be   :  { %v1501_v5 = vpop.eup %1500 }
0x12bf   :  { %974 = vrot.lane.b32.xlu1 %v1501_v5, %s1607_s12  ;;  %v1503_v6 = vpop.eup %1502 }
0x12c0   :  { %v1505_v8 = vpop.eup %1504 }
0x12c1   :  { %v955_v9 = vadd.f32 1.0, %v1505_v8 }
0x12c3   :  { %1506 = vrcp.f32 %v955_v9  ;;  %v967_v14 = vand.u32 2147483648, %v955_v9  ;;  %vm961_vm7 = vweird.f32 %v955_v9  ;;  %v965_v15 = vand.u32 2147483647, %v955_v9 }
0x12c5   :  { %v968_v17 = vor.u32 1.1754944e-38, %v967_v14  ;;  %vm966_vm9 = vcmp.eq.f32.partialorder %v965_v15, 8.507059e+37 }
0x12c7   :  { %668 = vrot.lane.b32.xlu1 %v1503_v6, %s1607_s12 }
0x12c9   :  { %v1507_v11 = vpop.eup %1506 }
0x12ca   :  { %v957_v12 = vmul.f32 %v1507_v11, %v955_v9  ;;  %vm962_vm6 = vweird.f32 %v1507_v11 }
0x12cb   :  { %vm963_vm8 = vmor %vm961_vm7, %vm962_vm6 }
0x12cc   :  { %v958_v10 = vsub.f32 1.0, %v957_v12 }
0x12ce   :  { %v959_v13 = vmul.f32 %v1507_v11, %v958_v10 }
0x12d0   :  { %v960_v4 = vadd.f32 %v1507_v11, %v959_v13 }
0x12d2   :  { %v964_v16 = vsel %vm963_vm8, %v1507_v11, %v960_v4 }
0x12d3   :  { %v969_v19 = vsel %vm966_vm9, %v968_v17, %v964_v16 }
0x12d4   :  { %v972_v21 = vmul.f32 %v969_v19, %v1820_v41  ;;  %v1861_v41 = vld [vmem:[#allocation6] ss:$0 sm:$0xff] }
0x1331   :  { %v975_v18 = vpop.permute.xlu1 %974 }
0x1332   :  { %v977_v20 = vmul.f32 %v975_v18, %v969_v19 }
0x1334   :  { %979 = vrot.lane.b32.xlu0 %v977_v20, %s1608_s13 }
0x1339   :  { %v669_v26 = vpop.permute.xlu1 %668 }
0x133a   :  { %v671_v27 = vmul.f32 %v669_v26, %v652_v58 }
0x133c   :  { %673 = vrot.lane.b32.xlu0 %v671_v27, %s1608_s13 }
0x13a6   :  { %v980_v28 = vpop.permute.xlu0 %979 }
0x13a7   :  { %v1837_v29 = vadd.f32 %v980_v28, %v972_v21 }
0x13a9   :  { %1508 = vtanh.f32 %v1837_v29 }
0x13ae   :  { %v674_v22 = vpop.permute.xlu0 %673 }
0x13af   :  { %v1509_v23 = vpop.eup %1508  ;;  %677 = vst.msk [vmem:[#allocation4 + $0xe] sm:$0x3] %vm70_vm0, %v674_v22 }
0x13b0   :  { %1263 = vst.msk [vmem:[#allocation2] sm:$0x3] %vm70_vm0, %v674_v22  ;;  %985 = vrot.lane.b32.xlu2 %v1509_v23, %s1607_s12 }
0x13b6   :  { %v679_v24 = vld [vmem:[#allocation4 + $0x8] sm:$0xff] }
0x13b7   :  { %1381 = vmatmul.msk.f32.gmra.mxu2 %vm130_vm3, %v679_v24 }
0x140a   :  { %v986_v25 = vpop.permute.xlu2 %985 }
0x140b   :  { %v988_v30 = vmul.f32 %v986_v25, %v969_v19 }
0x140d   :  { %990 = vrot.lane.b32.xlu1 %v988_v30, %s1608_s13 }
0x143a   :  { %v714_v31 = vpop.f32.mrf.mxu2 }
0x143b   :  { %v715_v32 = vadd.f32 %v1727_v1, %v714_v31 }
0x143d   :  { %718 = vst [vmem:[#allocation3 + $0x8] sm:$0xff] %v715_v32 }
0x1444   :  { %v995_v38 = vld [vmem:[#allocation3 + $0x8] sm:$0x3]  ;;  %v1062_v18 = vld [vmem:[#allocation3 + $0xa] sm:$0x3] }
0x147f   :  { %v991_v1 = vpop.permute.xlu1 %990 }
0x1480   :  { %994 = vst.msk [vmem:[#allocation5 + $0x6] sm:$0x3] %vm70_vm0, %v991_v1  ;;  %1390 = vmatmul.msk.f32.vlgmr.msrb.gmra.mxu0 %vm130_vm3, %v991_v1 }
0x1487   :  { %v1275_v37 = vld [vmem:[#allocation5] sm:$0xff] }
0x1488   :  { %1398 = vmatmul.msk.f32.vlgmr.msra.gmra.mxu0 %vm130_vm3, %v1275_v37 }
0x14fd   :  { %v1015_v39 = vpop.f32.mrf.mxu0 }
0x14fe   :  { %v1018_v40 = vadd.f32 %v1015_v39, %v995_v38 }
0x1500   :  { %1510 = vtanh.f32 %v1018_v40  ;;  %v1391_v58 = vmul.f32 -1.442695, %v1018_v40 }
0x1505   :  { %v1308_v42 = vpop.f32.mrf.mxu0 }
0x1506   :  { %v1511_v43 = vpop.eup %1510  ;;  %v1309_v44 = vadd.f32 %v1861_v41, %v1308_v42 }
0x1507   :  { %1041 = vrot.lane.b32.xlu2 %v1511_v43, %s1607_s12 }
0x1508   :  { %v1400_v45 = vmul.f32 -1.442695, %v1309_v44  ;;  %v1129_v44 = vld [vmem:[#allocation3 + $0xc] sm:$0x3] }
0x150a   :  { %1512 = vpow2.f32 %v1400_v45 }
0x1510   :  { %v1513_v46 = vpop.eup %1512 }
0x1511   :  { %v1320_v47 = vadd.f32 1.0, %v1513_v46 }
0x1513   :  { %1514 = vrcp.f32 %v1320_v47  ;;  %v1333_v51 = vand.u32 2147483648, %v1320_v47  ;;  %v1331_v53 = vand.u32 2147483647, %v1320_v47  ;;  %vm1327_vm11 = vweird.f32 %v1320_v47 }
0x1514   :  { %1516 = vpow2.f32 %v1391_v58 }
0x1515   :  { %v1334_v55 = vor.u32 1.1754944e-38, %v1333_v51  ;;  %vm1332_vm14 = vcmp.eq.f32.partialorder %v1331_v53, 8.507059e+37 }
0x1519   :  { %v1515_v48 = vpop.eup %1514 }
0x151a   :  { %v1323_v49 = vmul.f32 %v1515_v48, %v1320_v47  ;;  %vm1328_vm10 = vweird.f32 %v1515_v48  ;;  %v1517_v59 = vpop.eup %1516 }
0x151b   :  { %vm1329_vm12 = vmor %vm1327_vm11, %vm1328_vm10  ;;  %v1022_v60 = vadd.f32 1.0, %v1517_v59 }
0x151c   :  { %v1324_v50 = vsub.f32 1.0, %v1323_v49 }
0x151d   :  { %1518 = vrcp.f32 %v1022_v60  ;;  %v1034_v5 = vand.u32 2147483648, %v1022_v60  ;;  %vm1028_vm1 = vweird.f32 %v1022_v60  ;;  %v1032_v6 = vand.u32 2147483647, %v1022_v60 }
0x151e   :  { %v1325_v52 = vmul.f32 %v1515_v48, %v1324_v50 }
0x151f   :  { %v1035_v8 = vor.u32 1.1754944e-38, %v1034_v5  ;;  %vm1033_vm4 = vcmp.eq.f32.partialorder %v1032_v6, 8.507059e+37 }
0x1520   :  { %v1326_v54 = vadd.f32 %v1515_v48, %v1325_v52 }
0x1522   :  { %v1330_v56 = vsel %vm1329_vm12, %v1515_v48, %v1326_v54 }
0x1523   :  { %v1335_v57 = vsel %vm1332_vm14, %v1334_v55, %v1330_v56  ;;  %v1519_v61 = vpop.eup %1518 }
0x1524   :  { %1353 = vst.msk [vmem:[%s1911_s9] sm:$0xff] %vm1352_vm13, %v1335_v57  ;;  %v1024_v62 = vmul.f32 %v1519_v61, %v1022_v60  ;;  %vm1029_vm15 = vweird.f32 %v1519_v61 }
0x1525   :  { %vm1030_vm2 = vmor %vm1028_vm1, %vm1029_vm15 }
0x1526   :  { %v1025_v63 = vsub.f32 1.0, %v1024_v62 }
0x1528   :  { %v1026_v0 = vmul.f32 %v1519_v61, %v1025_v63 }
0x152a   :  { %v1027_v2 = vadd.f32 %v1519_v61, %v1026_v0 }
0x152c   :  { %v1031_v7 = vsel %vm1030_vm2, %v1519_v61, %v1027_v2 }
0x152d   :  { %v1036_v11 = vsel %vm1033_vm4, %v1035_v8, %v1031_v7 }
0x152e   :  { %v1039_v10 = vmul.f32 %v1036_v11, %v1837_v29 }
0x1561   :  { %v1042_v9 = vpop.permute.xlu2 %1041 }
0x1562   :  { %v1044_v12 = vmul.f32 %v1042_v9, %v1036_v11  ;;  %v1196_v9 = vld [vmem:[#allocation3 + $0xe] sm:$0x3] }
0x1564   :  { %1046 = vrot.lane.b32.xlu0 %v1044_v12, %s1608_s13 }
0x15d6   :  { %v1047_v13 = vpop.permute.xlu0 %1046 }
0x15d7   :  { %v1049_v4 = vadd.f32 %v1047_v13, %v1039_v10 }
0x15d9   :  { %1520 = vtanh.f32 %v1049_v4 }
0x15df   :  { %v1521_v14 = vpop.eup %1520 }
0x15e0   :  { %1052 = vrot.lane.b32.xlu1 %v1521_v14, %s1607_s12 }
0x1652   :  { %v1053_v15 = vpop.permute.xlu1 %1052 }
0x1653   :  { %v1055_v16 = vmul.f32 %v1053_v15, %v1036_v11 }
0x1655   :  { %1057 = vrot.lane.b32.xlu2 %v1055_v16, %s1608_s13 }
0x16af   :  { %v1058_v17 = vpop.permute.xlu2 %1057 }
0x16b0   :  { %1061 = vst.msk [vmem:[#allocation5 + $0x8] sm:$0x3] %vm70_vm0, %v1058_v17  ;;  %1392 = vmatmul.msk.f32.vlgmr.msrb.gmra.mxu1 %vm130_vm3, %v1058_v17 }
0x172d   :  { %v1082_v19 = vpop.f32.mrf.mxu1 }
0x172e   :  { %v1085_v20 = vadd.f32 %v1082_v19, %v1062_v18 }
0x1730   :  { %1522 = vtanh.f32 %v1085_v20  ;;  %v1393_v27 = vmul.f32 -1.442695, %v1085_v20 }
0x1732   :  { %1524 = vpow2.f32 %v1393_v27 }
0x1736   :  { %v1523_v26 = vpop.eup %1522 }
0x1737   :  { %1108 = vrot.lane.b32.xlu0 %v1523_v26, %s1607_s12 }
0x1738   :  { %v1525_v21 = vpop.eup %1524 }
0x1739   :  { %v1089_v28 = vadd.f32 1.0, %v1525_v21 }
0x173b   :  { %1526 = vrcp.f32 %v1089_v28  ;;  %v1101_v30 = vand.u32 2147483648, %v1089_v28  ;;  %vm1095_vm6 = vweird.f32 %v1089_v28  ;;  %v1099_v31 = vand.u32 2147483647, %v1089_v28 }
0x173d   :  { %v1102_v33 = vor.u32 1.1754944e-38, %v1101_v30  ;;  %vm1100_vm8 = vcmp.eq.f32.partialorder %v1099_v31, 8.507059e+37 }
0x1741   :  { %v1527_v29 = vpop.eup %1526 }
0x1742   :  { %v1091_v22 = vmul.f32 %v1527_v29, %v1089_v28  ;;  %vm1096_vm5 = vweird.f32 %v1527_v29 }
0x1743   :  { %vm1097_vm7 = vmor %vm1095_vm6, %vm1096_vm5 }
0x1744   :  { %v1092_v23 = vsub.f32 1.0, %v1091_v22 }
0x1746   :  { %v1093_v24 = vmul.f32 %v1527_v29, %v1092_v23 }
0x1748   :  { %v1094_v25 = vadd.f32 %v1527_v29, %v1093_v24 }
0x174a   :  { %v1098_v32 = vsel %vm1097_vm7, %v1527_v29, %v1094_v25 }
0x174b   :  { %v1103_v35 = vsel %vm1100_vm8, %v1102_v33, %v1098_v32 }
0x174c   :  { %v1106_v1 = vmul.f32 %v1103_v35, %v1049_v4 }
0x17a9   :  { %v1109_v34 = vpop.permute.xlu0 %1108 }
0x17aa   :  { %v1111_v36 = vmul.f32 %v1109_v34, %v1103_v35 }
0x17ac   :  { %1113 = vrot.lane.b32.xlu1 %v1111_v36, %s1608_s13 }
0x181e   :  { %v1114_v37 = vpop.permute.xlu1 %1113 }
0x181f   :  { %v1116_v38 = vadd.f32 %v1114_v37, %v1106_v1 }
0x1821   :  { %1528 = vtanh.f32 %v1116_v38 }
0x1827   :  { %v1529_v39 = vpop.eup %1528 }
0x1828   :  { %1119 = vrot.lane.b32.xlu2 %v1529_v39, %s1607_s12 }
0x1882   :  { %v1120_v40 = vpop.permute.xlu2 %1119 }
0x1883   :  { %v1122_v42 = vmul.f32 %v1120_v40, %v1103_v35 }
0x1885   :  { %1124 = vrot.lane.b32.xlu0 %v1122_v42, %s1608_s13 }
0x18f7   :  { %v1125_v43 = vpop.permute.xlu0 %1124 }
0x18f8   :  { %1128 = vst.msk [vmem:[#allocation5 + $0xa] sm:$0x3] %vm70_vm0, %v1125_v43  ;;  %1394 = vmatmul.msk.f32.vlgmr.msrb.gmra.mxu2 %vm130_vm3, %v1125_v43 }
0x197b   :  { %v1149_v45 = vpop.f32.mrf.mxu2 }
0x197c   :  { %v1152_v46 = vadd.f32 %v1149_v45, %v1129_v44 }
0x197e   :  { %1530 = vtanh.f32 %v1152_v46  ;;  %v1395_v48 = vmul.f32 -1.442695, %v1152_v46 }
0x1980   :  { %1532 = vpow2.f32 %v1395_v48 }
0x1984   :  { %v1531_v47 = vpop.eup %1530 }
0x1985   :  { %1175 = vrot.lane.b32.xlu1 %v1531_v47, %s1607_s12 }
0x1986   :  { %v1533_v49 = vpop.eup %1532 }
0x1987   :  { %v1156_v50 = vadd.f32 1.0, %v1533_v49 }
0x1989   :  { %1534 = vrcp.f32 %v1156_v50  ;;  %v1168_v56 = vand.u32 2147483648, %v1156_v50  ;;  %vm1162_vm10 = vweird.f32 %v1156_v50  ;;  %v1166_v57 = vand.u32 2147483647, %v1156_v50 }
0x198b   :  { %v1169_v59 = vor.u32 1.1754944e-38, %v1168_v56  ;;  %vm1167_vm12 = vcmp.eq.f32.partialorder %v1166_v57, 8.507059e+37 }
0x198f   :  { %v1535_v51 = vpop.eup %1534 }
0x1990   :  { %v1158_v52 = vmul.f32 %v1535_v51, %v1156_v50  ;;  %vm1163_vm9 = vweird.f32 %v1535_v51 }
0x1991   :  { %vm1164_vm11 = vmor %vm1162_vm10, %vm1163_vm9 }
0x1992   :  { %v1159_v53 = vsub.f32 1.0, %v1158_v52 }
0x1994   :  { %v1160_v54 = vmul.f32 %v1535_v51, %v1159_v53 }
0x1996   :  { %v1161_v55 = vadd.f32 %v1535_v51, %v1160_v54 }
0x1998   :  { %v1165_v58 = vsel %vm1164_vm11, %v1535_v51, %v1161_v55 }
0x1999   :  { %v1170_v61 = vsel %vm1167_vm12, %v1169_v59, %v1165_v58 }
0x199a   :  { %v1173_v63 = vmul.f32 %v1170_v61, %v1116_v38 }
0x19f7   :  { %v1176_v60 = vpop.permute.xlu1 %1175 }
0x19f8   :  { %v1178_v62 = vmul.f32 %v1176_v60, %v1170_v61 }
0x19fa   :  { %1180 = vrot.lane.b32.xlu2 %v1178_v62, %s1608_s13 }
0x1a54   :  { %v1181_v0 = vpop.permute.xlu2 %1180 }
0x1a55   :  { %v1183_v2 = vadd.f32 %v1181_v0, %v1173_v63 }
0x1a57   :  { %1536 = vtanh.f32 %v1183_v2 }
0x1a5d   :  { %v1537_v5 = vpop.eup %1536 }
0x1a5e   :  { %1186 = vrot.lane.b32.xlu0 %v1537_v5, %s1607_s12 }
0x1ad0   :  { %v1187_v6 = vpop.permute.xlu0 %1186 }
0x1ad1   :  { %v1189_v7 = vmul.f32 %v1187_v6, %v1170_v61 }
0x1ad3   :  { %1191 = vrot.lane.b32.xlu1 %v1189_v7, %s1608_s13 }
0x1b45   :  { %v1192_v8 = vpop.permute.xlu1 %1191 }
0x1b46   :  { %1195 = vst.msk [vmem:[#allocation5 + $0xc] sm:$0x3] %vm70_vm0, %v1192_v8  ;;  %1396 = vmatmul.msk.f32.vlgmr.msra.gmra.mxu3 %vm130_vm3, %v1192_v8 }
0x1bc9   :  { %v1216_v11 = vpop.f32.mrf.mxu3 }
0x1bca   :  { %v1219_v12 = vadd.f32 %v1216_v11, %v1196_v9 }
0x1bcc   :  { %1538 = vtanh.f32 %v1219_v12  ;;  %v1397_v13 = vmul.f32 -1.442695, %v1219_v12 }
0x1bce   :  { %1540 = vpow2.f32 %v1397_v13 }
0x1bd2   :  { %v1539_v10 = vpop.eup %1538 }
0x1bd3   :  { %1242 = vrot.lane.b32.xlu2 %v1539_v10, %s1607_s12 }
0x1bd4   :  { %v1541_v4 = vpop.eup %1540 }
0x1bd5   :  { %v1223_v14 = vadd.f32 1.0, %v1541_v4 }
0x1bd7   :  { %1542 = vrcp.f32 %v1223_v14  ;;  %v1235_v20 = vand.u32 2147483648, %v1223_v14  ;;  %vm1229_vm15 = vweird.f32 %v1223_v14  ;;  %v1233_v26 = vand.u32 2147483647, %v1223_v14 }
0x1bd9   :  { %v1236_v21 = vor.u32 1.1754944e-38, %v1235_v20  ;;  %vm1234_vm2 = vcmp.eq.f32.partialorder %v1233_v26, 8.507059e+37 }
0x1bdd   :  { %v1543_v15 = vpop.eup %1542 }
0x1bde   :  { %v1225_v16 = vmul.f32 %v1543_v15, %v1223_v14  ;;  %vm1230_vm14 = vweird.f32 %v1543_v15 }
0x1bdf   :  { %vm1231_vm1 = vmor %vm1229_vm15, %vm1230_vm14 }
0x1be0   :  { %v1226_v17 = vsub.f32 1.0, %v1225_v16 }
0x1be2   :  { %v1227_v18 = vmul.f32 %v1543_v15, %v1226_v17 }
0x1be4   :  { %v1228_v19 = vadd.f32 %v1543_v15, %v1227_v18 }
0x1be6   :  { %v1232_v27 = vsel %vm1231_vm1, %v1543_v15, %v1228_v19 }
0x1be7   :  { %v1237_v29 = vsel %vm1234_vm2, %v1236_v21, %v1232_v27 }
0x1be8   :  { %v1240_v23 = vmul.f32 %v1237_v29, %v1183_v2 }
0x1c2d   :  { %v1243_v28 = vpop.permute.xlu2 %1242 }
0x1c2e   :  { %v1245_v22 = vmul.f32 %v1243_v28, %v1237_v29 }
0x1c30   :  { %1247 = vrot.lane.b32.xlu0 %v1245_v22, %s1608_s13 }
0x1c38   :  { %1265 = vrot.lane.b32.xlu0 %v1829_v3, %s1609_s4 }
0x1ca2   :  { %v1248_v24 = vpop.permute.xlu0 %1247 }
0x1ca3   :  { %v1250_v25 = vadd.f32 %v1248_v24, %v1240_v23 }
0x1ca5   :  { %1544 = vtanh.f32 %v1250_v25 }
0x1caa   :  { %v1266_v30 = vpop.permute.xlu0 %1265 }
0x1cab   :  { %v1545_v31 = vpop.eup %1544  ;;  %1268 = vst.msk [vmem:[#allocation2 + $0x2] sm:$0x3] %vm70_vm0, %v1266_v30 }
0x1cac   :  { %1253 = vrot.lane.b32.xlu1 %v1545_v31, %s1607_s12 }
0x1cb4   :  { %1271 = vrot.lane.b32.xlu1 %v1250_v25, %s1609_s4 }
0x1d1e   :  { %v1254_v32 = vpop.permute.xlu1 %1253 }
0x1d1f   :  { %v1256_v33 = vmul.f32 %v1254_v32, %v1237_v29 }
0x1d21   :  { %1258 = vrot.lane.b32.xlu2 %v1256_v33, %s1608_s13 }
0x1d26   :  { %v1272_v34 = vpop.permute.xlu1 %1271 }
0x1d27   :  { %1274 = vst.msk [vmem:[#allocation2 + $0x6] sm:$0x3] %vm70_vm0, %v1272_v34 }
0x1d7b   :  { %v1259_v35 = vpop.permute.xlu2 %1258 }
0x1d7c   :  { %1262 = vst.msk [vmem:[#allocation5 + $0xe] sm:$0x3] %vm70_vm0, %v1259_v35 }
0x1d7d   :  { %1269 = vst.msk [vmem:[#allocation2 + $0x4] sm:$0x3] %vm70_vm0, %v1259_v35 }
0x1d83   :  { %v1276_v3 = vld [vmem:[#allocation5 + $0x8] sm:$0xff] }
0x1d84   :  { %1399 = vmatmul.msk.f32.gmra.mxu0 %vm130_vm3, %v1276_v3 }
0x1e01   :  { %v1311_v36 = vpop.f32.mrf.mxu0 }
0x1e02   :  { %v1312_v1 = vadd.f32 %v1861_v41, %v1311_v36 }
0x1e04   :  { %v1401_v37 = vmul.f32 -1.442695, %v1312_v1 }
0x1e06   :  { %1546 = vpow2.f32 %v1401_v37 }
0x1e0c   :  { %v1547_v38 = vpop.eup %1546 }
0x1e0d   :  { %v1321_v39 = vadd.f32 1.0, %v1547_v38 }
0x1e0f   :  { %1548 = vrcp.f32 %v1321_v39  ;;  %v1348_v44 = vand.u32 2147483648, %v1321_v39  ;;  %v1346_v46 = vand.u32 2147483647, %v1321_v39  ;;  %vm1342_vm0 = vweird.f32 %v1321_v39 }
0x1e11   :  { %v1349_v48 = vor.u32 1.1754944e-38, %v1348_v44  ;;  %vm1347_vm3 = vcmp.eq.f32.partialorder %v1346_v46, 8.507059e+37 }
0x1e15   :  { %v1549_v40 = vpop.eup %1548 }
0x1e16   :  { %v1338_v42 = vmul.f32 %v1549_v40, %v1321_v39  ;;  %vm1343_vm4 = vweird.f32 %v1549_v40 }
0x1e17   :  { %vm1344_vm5 = vmor %vm1342_vm0, %vm1343_vm4 }
0x1e18   :  { %v1339_v43 = vsub.f32 1.0, %v1338_v42 }
0x1e1a   :  { %v1340_v45 = vmul.f32 %v1549_v40, %v1339_v43 }
0x1e1c   :  { %v1341_v47 = vadd.f32 %v1549_v40, %v1340_v45 }
0x1e1e   :  { %v1345_v49 = vsel %vm1344_vm5, %v1549_v40, %v1341_v47 }
0x1e1f   :  { %v1350_v50 = vsel %vm1347_vm3, %v1349_v48, %v1345_v49 }
0x1e20   :  { %1354 = vst.msk [vmem:[%s1911_s9 + $0x8] sm:$0xff] %vm1352_vm13, %v1350_v50 }
0x1e21   :  { %1359 = vsyncpa [#allocation8], 1 }
0x1e22   :  { %1360 = vsyncpa [#allocation10], 1 }

</bundles_post_ra>
